<compile_context>
chip_gen: v7x
topology: tpu7x:2x2x1
jax: 0.10.0
libtpu: 0.0.40
codegen_flags: <defaults>
</compile_context>

<pallas_src>
import functools

import jax
import jax.numpy as jnp
from jax.experimental import pallas as pl
from jax.experimental.pallas import tpu as pltpu

LN_EPS = 1e-5          # PyTorch nn.LayerNorm default
NEG_INF = -1e30        # softmax mask value for padded key columns


# ----------------------------- small helpers ---------------------------------

def _round_up(x, m):
    return (x + m - 1) // m * m


def _erf(x):
    # Abramowitz & Stegun 7.1.26 (max abs err ~1.5e-7 ~ f32 ulp); uses exp only.
    a1, a2, a3, a4, a5 = 0.254829592, -0.284496736, 1.421413741, -1.453152027, 1.061405429
    p = 0.3275911
    s = jnp.where(x >= 0.0, 1.0, -1.0)
    ax = jnp.abs(x)
    t = 1.0 / (1.0 + p * ax)
    poly = ((((a5 * t + a4) * t + a3) * t + a2) * t + a1) * t
    return s * (1.0 - poly * jnp.exp(-ax * ax))


def _gelu_exact(x):
    # matches torch.nn.GELU() (erf-based) to ~f32 precision
    return 0.5 * x * (1.0 + _erf(x * 0.7071067811865476))


def _layernorm(x, w, b):
    mu = jnp.mean(x, axis=-1, keepdims=True)
    xc = x - mu
    var = jnp.mean(xc * xc, axis=-1, keepdims=True)
    return xc * jax.lax.rsqrt(var + LN_EPS) * w + b


# --------------------------- patch-embed matmul -------------------------------

def _matmul_bias_kernel(x_ref, w_ref, b_ref, o_ref):
    o_ref[...] = (jnp.dot(x_ref[...], w_ref[...],
                          preferred_element_type=jnp.float32)
                  + b_ref[0]).astype(o_ref.dtype)


def matmul_bias(x, w, b, *, tm=256, mxu_dtype=jnp.bfloat16):
    """x: (M, K), w: (K, N), b: (1, N) -> (M, N) f32.

    M is zero-padded to a multiple of tm and tiled with grid = M_pad/tm (no
    single-block fallback), so the input DMA pipelines against MXU work at any
    batch size.  Operands are cast to bf16 for the MXU; accumulation is f32.
    """
    m, k = x.shape
    n = w.shape[1]
    tm = min(tm, _round_up(m, 8))
    m_pad = _round_up(m, tm)
    if m_pad != m:
        x = jnp.pad(x, ((0, m_pad - m), (0, 0)))
    out = pl.pallas_call(
        _matmul_bias_kernel,
        out_shape=jax.ShapeDtypeStruct((m_pad, n), jnp.float32),
        grid=(m_pad // tm,),
        in_specs=[pl.BlockSpec((tm, k), lambda i: (i, 0)),
                  pl.BlockSpec((k, n), lambda i: (0, 0)),
                  pl.BlockSpec((1, n), lambda i: (0, 0))],
        out_specs=pl.BlockSpec((tm, n), lambda i: (i, 0)),
        compiler_params=pltpu.CompilerParams(dimension_semantics=("parallel",)),
    )(x.astype(mxu_dtype), w.astype(mxu_dtype), b)
    return out[:m] if m_pad != m else out


# --------------------------- fused transformer stack --------------------------

def _fused_blocks_kernel(x_ref, qkvw_ref, projw_ref, fc1w_ref, fc2w_ref,
                         vecs_ref, qkvb_ref, fc1b_ref, o_ref,
                         *, num_heads, n_valid, approx_recip):
    """One (batch-tile, depth) grid step = one ConvFormerBlock applied to the
    VMEM-resident (TB, N_pad, C) activation tile."""
    d = pl.program_id(1)

    # Depth 0: seed the resident activation tile from the embedded tokens.
    @pl.when(d == 0)
    def _():
        o_ref[...] = x_ref[...]

    tb, n_pad, c = o_ref.shape
    m = tb * n_pad
    nh = num_heads
    hd = c // nh
    scale = 1.0 / (hd ** 0.5)

    x = o_ref[...].reshape(m, c)                    # (M, C) f32, resident

    vc = vecs_ref[0]                                # (6, C): packed small vectors
    ln1w, ln1b = vc[0:1], vc[1:2]
    ln2w, ln2b = vc[2:3], vc[3:4]
    projb, fc2b = vc[4:5], vc[5:6]

    # ---- attention branch: x + proj(MHA(LN1(x))) ----
    xn = _layernorm(x, ln1w, ln1b)
    w_qkv = qkvw_ref[0]                             # (C, 3C) bf16
    qkv = jnp.dot(xn.astype(w_qkv.dtype), w_qkv,
                  preferred_element_type=jnp.float32) + qkvb_ref[0]

    def to_zb(t):
        # (M, C) -> (nh*tb, n_pad, hd) with merged batch axis z = h*tb + b;
        # only a lane-split reshape, a (1,0,2) transpose and contiguous
        # leading-dim regrouping -> head dim stays lane-minor for QK^T.
        return t.reshape(m, nh, hd).transpose(1, 0, 2).reshape(nh * tb, n_pad, hd)

    q = to_zb(qkv[:, 0 * c:1 * c]) * scale          # torch qkv cols [0:C] = q
    k = to_zb(qkv[:, 1 * c:2 * c])
    v = to_zb(qkv[:, 2 * c:3 * c])

    # Single batched contraction over (batch-tile, head); d is lane-minor.
    logits = jnp.einsum('znd,zmd->znm', q, k, preferred_element_type=jnp.float32)
    key_ids = jax.lax.broadcasted_iota(jnp.int32, (1, 1, n_pad), 2)
    logits = jnp.where(key_ids < n_valid, logits, NEG_INF)   # mask padded keys
    logits = logits - jnp.max(logits, axis=-1, keepdims=True)
    p = jnp.exp(logits)
    denom = jnp.sum(p, axis=-1, keepdims=True)
    if approx_recip:
        p = p * pl.reciprocal(denom, approx=True)   # EUP; free bundle slot
    else:
        p = p / denom                               # exact f32 validation path
    attn = jnp.einsum('znm,zmd->znd', p, v, preferred_element_type=jnp.float32)
    attn = attn.reshape(nh, m, hd).transpose(1, 0, 2).reshape(m, c)

    w_proj = projw_ref[0]
    attn = jnp.dot(attn.astype(w_proj.dtype), w_proj,
                   preferred_element_type=jnp.float32) + projb
    x = x + attn

    # ---- MLP branch: x + fc2(gelu(fc1(LN2(x)))) ----
    xn2 = _layernorm(x, ln2w, ln2b)
    w1, w2 = fc1w_ref[0], fc2w_ref[0]
    h1 = jnp.dot(xn2.astype(w1.dtype), w1,
                 preferred_element_type=jnp.float32) + fc1b_ref[0]
    h1 = _gelu_exact(h1)
    h2 = jnp.dot(h1.astype(w2.dtype), w2,
                 preferred_element_type=jnp.float32) + fc2b

    # Padded token rows stay finite but unused; only the cls row feeds the head.
    o_ref[...] = (x + h2).reshape(tb, n_pad, c)


def _choose_tb(b, n_pad, target_m=256):
    """Batch-tile so tb*n_pad ~ target_m (fills 256-wide MXU passes on v6e/v7x,
    128-aligned on v5e), while keeping >= 2 parallel batch blocks when the batch
    allows (v7x has 2 TensorCores sharded over the 'parallel' axis)."""
    tb = min(b, max(1, -(-target_m // n_pad)))
    if b >= 2:
        tb = max(1, min(tb, b // 2))
    while b % tb:
        tb -= 1
    return max(tb, 1)


def _fused_vmem_limit(tb, n_pad, c, hidden, num_heads):
    """Explicit scoped-VMEM budget: double-buffered blocks + intermediates,
    2x slack, floor 32 MiB (raises v5e's 16 MiB default), cap 64 MiB (v7x)."""
    m = tb * n_pad
    act = m * c * 4
    w_bytes = (3 * c * c + c * c + 2 * c * hidden) * 2         # bf16 weights
    vec_bytes = (6 * c + 3 * c + hidden) * 4
    pipeline = 2 * (2 * act + w_bytes + vec_bytes)             # double-buffered
    interm = m * (4 * c + 2 * hidden) * 4 + 2 * num_heads * tb * n_pad * n_pad * 4
    need = pipeline + interm
    return int(max(32 * 2 ** 20, min(64 * 2 ** 20, 2 * need)))


def fused_blocks(tok, blocks, *, num_heads, n_valid, mxu_dtype=jnp.bfloat16,
                 tb=None):
    """Run every ConvFormerBlock inside a single pallas_call.

    tok: (B, N_pad, C) f32.  blocks: dict of depth-stacked packed weights.
    """
    b, n_pad, c = tok.shape
    depth = blocks["qkv_w"].shape[0]
    hidden = blocks["fc1_w"].shape[2]
    if tb is None:
        tb = _choose_tb(b, n_pad)

    qkv_w = blocks["qkv_w"].astype(mxu_dtype)
    proj_w = blocks["proj_w"].astype(mxu_dtype)
    fc1_w = blocks["fc1_w"].astype(mxu_dtype)
    fc2_w = blocks["fc2_w"].astype(mxu_dtype)
    vecs = blocks["vecs_c"]
    qkv_b = blocks["qkv_b"]
    fc1_b = blocks["fc1_b"]

    def wspec(arr):
        return pl.BlockSpec((1,) + arr.shape[1:], lambda bb, dd: (dd, 0, 0))

    approx = mxu_dtype != jnp.float32

    return pl.pallas_call(
        functools.partial(_fused_blocks_kernel, num_heads=num_heads,
                          n_valid=n_valid, approx_recip=approx),
        out_shape=jax.ShapeDtypeStruct((b, n_pad, c), jnp.float32),
        grid=(b // tb, depth),
        in_specs=[pl.BlockSpec((tb, n_pad, c), lambda bb, dd: (bb, 0, 0)),
                  wspec(qkv_w), wspec(proj_w), wspec(fc1_w), wspec(fc2_w),
                  wspec(vecs), wspec(qkv_b), wspec(fc1_b)],
        # Same output block index across the depth axis -> activation tile stays
        # resident in VMEM for the whole stack; written back once per batch tile.
        out_specs=pl.BlockSpec((tb, n_pad, c), lambda bb, dd: (bb, 0, 0)),
        # Token input shares its HBM buffer with the output.
        input_output_aliases={0: 0},
        compiler_params=pltpu.CompilerParams(
            dimension_semantics=("parallel", "arbitrary"),
            vmem_limit_bytes=_fused_vmem_limit(tb, n_pad, c, hidden, num_heads)),
    )(tok, qkv_w, proj_w, fc1_w, fc2_w, vecs, qkv_b, fc1_b)


# --------------------------------- head ---------------------------------------

def _head_kernel(cls_ref, lnw, lnb, hw, hb, o_ref):
    xn = _layernorm(cls_ref[...], lnw[0], lnb[0])
    o_ref[...] = jnp.dot(xn, hw[...], preferred_element_type=jnp.float32) + hb[0]


def head_forward(cls_tok, lnw, lnb, hw, hb):
    """cls_tok: (B, C) -> logits (B, num_classes).  Only the cls token is DMA'd."""
    b, c = cls_tok.shape
    ncls = hw.shape[1]
    return pl.pallas_call(
        _head_kernel,
        out_shape=jax.ShapeDtypeStruct((b, ncls), jnp.float32),
        grid=(1,),
        in_specs=[pl.BlockSpec((b, c), lambda i: (0, 0)),
                  pl.BlockSpec((1, c), lambda i: (0, 0)),
                  pl.BlockSpec((1, c), lambda i: (0, 0)),
                  pl.BlockSpec((c, ncls), lambda i: (0, 0)),
                  pl.BlockSpec((1, ncls), lambda i: (0, 0))],
        out_specs=pl.BlockSpec((b, ncls), lambda i: (0, 0)),
    )(cls_tok, lnw, lnb, hw, hb)


# --------------------------------- glue ---------------------------------------

def extract_patches(x, patch_size):
    """NCHW -> (B, P, C*ph*pw), matching Conv2d(k=stride=patch) + flatten(2).T."""
    b, c, h, w = x.shape
    ph = pw = patch_size
    gh, gw = h // ph, w // pw
    x = x.reshape(b, c, gh, ph, gw, pw)
    x = x.transpose(0, 2, 4, 1, 3, 5)              # (B, gh, gw, C, ph, pw)
    return x.reshape(b, gh * gw, c * ph * pw)


def convformer_forward(params, x, *, patch_size, num_heads,
                       mxu_dtype=jnp.bfloat16):
    b = x.shape[0]
    patches = extract_patches(x, patch_size)       # (B, P, K)
    p, kdim = patches.shape[1], patches.shape[2]
    e = params["patch_w"].shape[1]

    emb = matmul_bias(patches.reshape(b * p, kdim), params["patch_w"],
                      params["patch_b"], mxu_dtype=mxu_dtype).reshape(b, p, e)

    cls = jnp.broadcast_to(params["cls_token"], (b, 1, e))
    tok = jnp.concatenate([cls, emb], axis=1) + params["pos_embed"]

    # Pad tokens to a sublane-friendly multiple of 8; padded keys are masked in
    # the softmax inside the fused kernel.
    n_tok = p + 1
    n_pad = _round_up(n_tok, 8)
    if n_pad != n_tok:
        tok = jnp.pad(tok, ((0, 0), (0, n_pad - n_tok), (0, 0)))

    tok = fused_blocks(tok, params["blocks"], num_heads=num_heads,
                       n_valid=n_tok, mxu_dtype=mxu_dtype)

    cls_out = tok[:, 0, :]                         # only the cls token feeds the head
    return head_forward(cls_out, params["norm_w"], params["norm_b"],
                        params["head_w"], params["head_b"])


def init_params(key, *, in_chans, patch_size, embed_dim, depth, mlp_ratio,
                num_patches, num_classes):
    kdim = in_chans * patch_size * patch_size
    hidden = int(embed_dim * mlp_ratio)
    n_tok = num_patches + 1
    e = embed_dim
    keys = iter(jax.random.split(key, 12))

    def tn(k, shape, std=0.02):                    # trunc_normal_(std=0.02)
        return (std * jax.random.truncated_normal(k, -2.0, 2.0, shape)).astype(jnp.float32)

    # Packed per-layer vectors: rows = [ln1_w, ln1_b, ln2_w, ln2_b, proj_b, fc2_b]
    vecs = jnp.zeros((depth, 6, e), jnp.float32)
    vecs = vecs.at[:, 0, :].set(1.0).at[:, 2, :].set(1.0)

    return {
        # conv weight stored pre-reshaped as (C*ph*pw, E) = torch weight.reshape(E,-1).T
        "patch_w": tn(next(keys), (kdim, e)),
        "patch_b": jnp.zeros((1, e), jnp.float32),
        "cls_token": tn(next(keys), (1, 1, e)),
        "pos_embed": tn(next(keys), (1, n_tok, e)),
        "norm_w": jnp.ones((1, e), jnp.float32),
        "norm_b": jnp.zeros((1, e), jnp.float32),
        "head_w": tn(next(keys), (e, num_classes)),
        "head_b": jnp.zeros((1, num_classes), jnp.float32),
        # depth-stacked, fused/packed block params
        "blocks": {
            # fused qkv weight: columns [0:C]=q, [C:2C]=k, [2C:3C]=v
            # (== torch qkv Linear weight (3C, C), transposed)
            "qkv_w": tn(next(keys), (depth, e, 3 * e)),
            "qkv_b": jnp.zeros((depth, 1, 3 * e), jnp.float32),
            "proj_w": tn(next(keys), (depth, e, e)),
            "fc1_w": tn(next(keys), (depth, e, hidden)),
            "fc1_b": jnp.zeros((depth, 1, hidden), jnp.float32),
            "fc2_w": tn(next(keys), (depth, hidden, e)),
            "vecs_c": vecs,
        },
    }


if __name__ == "__main__":
    # small config consistent with the module's forward
    B, IN_CHANS, IMG, PATCH = 2, 3, 16, 4
    EMBED, DEPTH, HEADS, MLP_RATIO, NCLS = 64, 2, 4, 4.0, 4
    NUM_PATCHES = (IMG // PATCH) ** 2              # 16 patches -> 17 tokens

    root = jax.random.PRNGKey(0)
    kparam, kx = jax.random.split(root)
    params = init_params(kparam, in_chans=IN_CHANS, patch_size=PATCH,
                         embed_dim=EMBED, depth=DEPTH, mlp_ratio=MLP_RATIO,
                         num_patches=NUM_PATCHES, num_classes=NCLS)

    x = jax.random.normal(kx, (B, IN_CHANS, IMG, IMG), dtype=jnp.float32)

    fwd = jax.jit(functools.partial(convformer_forward,
                                    patch_size=PATCH, num_heads=HEADS))
    logits = fwd(params, x)
    jax.block_until_ready(logits)
    assert logits.shape == (B, NCLS)
    assert bool(jnp.all(jnp.isfinite(logits)))
    print("KERNEL_OK")
</pallas_src>

<mosaic_0001>
module attributes {stable_mosaic.version = 11 : i64} {
  func.func @_matmul_bias_kernel(%arg0: i32, %arg1: memref<32x48xbf16, #tpu.memory_space<vmem>>, %arg2: memref<48x64xbf16, #tpu.memory_space<vmem>>, %arg3: memref<1x64xf32, #tpu.memory_space<vmem>>, %arg4: memref<32x64xf32, #tpu.memory_space<vmem>>) attributes {dimension_semantics = [#tpu.dimension_semantics<parallel>], iteration_bounds = array<i64: 1>, scalar_prefetch = 0 : i64, scratch_operands = 0 : i64, tpu.core_type = #tpu.core_type<tc>, window_params = [{transform_indices = @transform_0, window_bounds = array<i64: 32, 48>}, {pipeline_mode = #tpu.pipeline_mode<synchronous>, transform_indices = @transform_1, window_bounds = array<i64: 48, 64>}, {pipeline_mode = #tpu.pipeline_mode<synchronous>, transform_indices = @transform_2, window_bounds = array<i64: 1, 64>}, {transform_indices = @transform_3, window_bounds = array<i64: 32, 64>}]} {
    %c0 = arith.constant 0 : index
    %c0_0 = arith.constant 0 : index
    %0 = vector.load %arg1[%c0, %c0_0] : memref<32x48xbf16, #tpu.memory_space<vmem>>, vector<32x48xbf16>
    %c0_1 = arith.constant 0 : index
    %c0_2 = arith.constant 0 : index
    %1 = vector.load %arg2[%c0_1, %c0_2] : memref<48x64xbf16, #tpu.memory_space<vmem>>, vector<48x64xbf16>
    %cst = arith.constant dense<0.000000e+00> : vector<32x64xf32>
    %2 = tpu.matmul %0, %1, %cst {dimension_numbers = #tpu.dot_dimension_numbers<[1], [0], [0], [1], [0, 0, 1, 1], [], []>} : vector<32x48xbf16>, vector<48x64xbf16>, vector<32x64xf32> -> vector<32x64xf32>
    %c0_3 = arith.constant 0 : index
    %c0_4 = arith.constant 0 : index
    %3 = vector.load %arg3[%c0_3, %c0_4] : memref<1x64xf32, #tpu.memory_space<vmem>>, vector<1x64xf32>
    %4 = vector.shape_cast %3 : vector<1x64xf32> to vector<64xf32>
    %5 = vector.shape_cast %4 : vector<64xf32> to vector<1x64xf32>
    %6 = vector.broadcast %5 : vector<1x64xf32> to vector<32x64xf32>
    %7 = arith.addf %2, %6 : vector<32x64xf32>
    %c0_5 = arith.constant 0 : index
    %c0_6 = arith.constant 0 : index
    %8 = vector.load %arg4[%c0_5, %c0_6] : memref<32x64xf32, #tpu.memory_space<vmem>>, vector<32x64xf32>
    tpu.vector_store %arg4[%c0_5, %c0_6], %7 {strides = array<i32>} : memref<32x64xf32, #tpu.memory_space<vmem>>, vector<32x64xf32>,
    return
  }
  func.func @transform_0(%arg0: i32) -> (i32, i32) {
    %c0_i32 = arith.constant 0 : i32
    %c0_i32_0 = arith.constant 0 : i32
    return %arg0, %c0_i32 : i32, i32
  }
  func.func @transform_1(%arg0: i32) -> (i32, i32) {
    %c0_i32 = arith.constant 0 : i32
    %c0_i32_0 = arith.constant 0 : i32
    %c0_i32_1 = arith.constant 0 : i32
    return %c0_i32, %c0_i32_0 : i32, i32
  }
  func.func @transform_2(%arg0: i32) -> (i32, i32) {
    %c0_i32 = arith.constant 0 : i32
    %c0_i32_0 = arith.constant 0 : i32
    %c0_i32_1 = arith.constant 0 : i32
    return %c0_i32, %c0_i32_0 : i32, i32
  }
  func.func @transform_3(%arg0: i32) -> (i32, i32) {
    %c0_i32 = arith.constant 0 : i32
    %c0_i32_0 = arith.constant 0 : i32
    return %arg0, %c0_i32 : i32, i32
  }
}

module attributes {stable_mosaic.version = 11 : i64} {
  func.func @_head_kernel(%arg0: i32, %arg1: memref<2x64xf32, #tpu.memory_space<vmem>>, %arg2: memref<1x64xf32, #tpu.memory_space<vmem>>, %arg3: memref<1x64xf32, #tpu.memory_space<vmem>>, %arg4: memref<64x4xf32, #tpu.memory_space<vmem>>, %arg5: memref<1x4xf32, #tpu.memory_space<vmem>>, %arg6: memref<2x4xf32, #tpu.memory_space<vmem>>) attributes {dimension_semantics = [#tpu.dimension_semantics<arbitrary>], iteration_bounds = array<i64: 1>, scalar_prefetch = 0 : i64, scratch_operands = 0 : i64, tpu.core_type = #tpu.core_type<tc>, window_params = [{pipeline_mode = #tpu.pipeline_mode<synchronous>, transform_indices = @transform_0, window_bounds = array<i64: 2, 64>}, {pipeline_mode = #tpu.pipeline_mode<synchronous>, transform_indices = @transform_1, window_bounds = array<i64: 1, 64>}, {pipeline_mode = #tpu.pipeline_mode<synchronous>, transform_indices = @transform_2, window_bounds = array<i64: 1, 64>}, {pipeline_mode = #tpu.pipeline_mode<synchronous>, transform_indices = @transform_3, window_bounds = array<i64: 64, 4>}, {pipeline_mode = #tpu.pipeline_mode<synchronous>, transform_indices = @transform_4, window_bounds = array<i64: 1, 4>}, {pipeline_mode = #tpu.pipeline_mode<synchronous>, transform_indices = @transform_5, window_bounds = array<i64: 2, 4>}]} {
    %c0 = arith.constant 0 : index
    %c0_0 = arith.constant 0 : index
    %0 = vector.load %arg1[%c0, %c0_0] : memref<2x64xf32, #tpu.memory_space<vmem>>, vector<2x64xf32>
    %c0_1 = arith.constant 0 : index
    %c0_2 = arith.constant 0 : index
    %1 = vector.load %arg2[%c0_1, %c0_2] : memref<1x64xf32, #tpu.memory_space<vmem>>, vector<1x64xf32>
    %2 = vector.shape_cast %1 : vector<1x64xf32> to vector<64xf32>
    %c0_3 = arith.constant 0 : index
    %c0_4 = arith.constant 0 : index
    %3 = vector.load %arg3[%c0_3, %c0_4] : memref<1x64xf32, #tpu.memory_space<vmem>>, vector<1x64xf32>
    %4 = vector.shape_cast %3 : vector<1x64xf32> to vector<64xf32>
    %cst = arith.constant dense<0.000000e+00> : vector<2xf32>
    %5 = vector.multi_reduction <add>, %0, %cst [1] : vector<2x64xf32> to vector<2xf32>
    %6 = vector.shape_cast %5 : vector<2xf32> to vector<2x1xf32>
    %cst_5 = arith.constant 6.400000e+01 : f32
    %7 = vector.broadcast %cst_5 : f32 to vector<2x1xf32>
    %8 = arith.divf %6, %7 : vector<2x1xf32>
    %9 = vector.broadcast %8 : vector<2x1xf32> to vector<2x64xf32>
    %10 = arith.subf %0, %9 : vector<2x64xf32>
    %11 = arith.mulf %10, %10 : vector<2x64xf32>
    %cst_6 = arith.constant dense<0.000000e+00> : vector<2xf32>
    %12 = vector.multi_reduction <add>, %11, %cst_6 [1] : vector<2x64xf32> to vector<2xf32>
    %13 = vector.shape_cast %12 : vector<2xf32> to vector<2x1xf32>
    %cst_7 = arith.constant 6.400000e+01 : f32
    %14 = vector.broadcast %cst_7 : f32 to vector<2x1xf32>
    %15 = arith.divf %13, %14 : vector<2x1xf32>
    %cst_8 = arith.constant 9.99999974E-6 : f32
    %16 = vector.broadcast %cst_8 : f32 to vector<2x1xf32>
    %17 = arith.addf %15, %16 : vector<2x1xf32>
    %18 = math.rsqrt %17 : vector<2x1xf32>
    %19 = vector.broadcast %18 : vector<2x1xf32> to vector<2x64xf32>
    %20 = arith.mulf %10, %19 : vector<2x64xf32>
    %21 = vector.shape_cast %2 : vector<64xf32> to vector<1x64xf32>
    %22 = vector.broadcast %21 : vector<1x64xf32> to vector<2x64xf32>
    %23 = arith.mulf %20, %22 : vector<2x64xf32>
    %24 = vector.shape_cast %4 : vector<64xf32> to vector<1x64xf32>
    %25 = vector.broadcast %24 : vector<1x64xf32> to vector<2x64xf32>
    %26 = arith.addf %23, %25 : vector<2x64xf32>
    %c0_9 = arith.constant 0 : index
    %c0_10 = arith.constant 0 : index
    %27 = vector.load %arg4[%c0_9, %c0_10] : memref<64x4xf32, #tpu.memory_space<vmem>>, vector<64x4xf32>
    %cst_11 = arith.constant dense<0.000000e+00> : vector<2x4xf32>
    %28 = tpu.matmul %26, %27, %cst_11 {dimension_numbers = #tpu.dot_dimension_numbers<[1], [0], [0], [1], [0, 0, 1, 1], [], []>} : vector<2x64xf32>, vector<64x4xf32>, vector<2x4xf32> -> vector<2x4xf32>
    %c0_12 = arith.constant 0 : index
    %c0_13 = arith.constant 0 : index
    %29 = vector.load %arg5[%c0_12, %c0_13] : memref<1x4xf32, #tpu.memory_space<vmem>>, vector<1x4xf32>
    %30 = vector.shape_cast %29 : vector<1x4xf32> to vector<4xf32>
    %31 = vector.shape_cast %30 : vector<4xf32> to vector<1x4xf32>
    %32 = vector.broadcast %31 : vector<1x4xf32> to vector<2x4xf32>
    %33 = arith.addf %28, %32 : vector<2x4xf32>
    %c0_14 = arith.constant 0 : index
    %c0_15 = arith.constant 0 : index
    %34 = vector.load %arg6[%c0_14, %c0_15] : memref<2x4xf32, #tpu.memory_space<vmem>>, vector<2x4xf32>
    tpu.vector_store %arg6[%c0_14, %c0_15], %33 {strides = array<i32>} : memref<2x4xf32, #tpu.memory_space<vmem>>, vector<2x4xf32>,
    return
  }
  func.func @transform_0(%arg0: i32) -> (i32, i32) {
    %c0_i32 = arith.constant 0 : i32
    %c0_i32_0 = arith.constant 0 : i32
    %c0_i32_1 = arith.constant 0 : i32
    return %c0_i32, %c0_i32_0 : i32, i32
  }
  func.func @transform_1(%arg0: i32) -> (i32, i32) {
    %c0_i32 = arith.constant 0 : i32
    %c0_i32_0 = arith.constant 0 : i32
    %c0_i32_1 = arith.constant 0 : i32
    return %c0_i32, %c0_i32_0 : i32, i32
  }
  func.func @transform_2(%arg0: i32) -> (i32, i32) {
    %c0_i32 = arith.constant 0 : i32
    %c0_i32_0 = arith.constant 0 : i32
    %c0_i32_1 = arith.constant 0 : i32
    return %c0_i32, %c0_i32_0 : i32, i32
  }
  func.func @transform_3(%arg0: i32) -> (i32, i32) {
    %c0_i32 = arith.constant 0 : i32
    %c0_i32_0 = arith.constant 0 : i32
    %c0_i32_1 = arith.constant 0 : i32
    return %c0_i32, %c0_i32_0 : i32, i32
  }
  func.func @transform_4(%arg0: i32) -> (i32, i32) {
    %c0_i32 = arith.constant 0 : i32
    %c0_i32_0 = arith.constant 0 : i32
    %c0_i32_1 = arith.constant 0 : i32
    return %c0_i32, %c0_i32_0 : i32, i32
  }
  func.func @transform_5(%arg0: i32) -> (i32, i32) {
    %c0_i32 = arith.constant 0 : i32
    %c0_i32_0 = arith.constant 0 : i32
    %c0_i32_1 = arith.constant 0 : i32
    return %c0_i32, %c0_i32_0 : i32, i32
  }
}

module attributes {stable_mosaic.version = 11 : i64} {
  func.func @_fused_blocks_kernel(%arg0: i32, %arg1: i32, %arg2: memref<1x24x64xf32, #tpu.memory_space<vmem>>, %arg3: memref<1x64x192xbf16, #tpu.memory_space<vmem>>, %arg4: memref<1x64x64xbf16, #tpu.memory_space<vmem>>, %arg5: memref<1x64x256xbf16, #tpu.memory_space<vmem>>, %arg6: memref<1x256x64xbf16, #tpu.memory_space<vmem>>, %arg7: memref<1x6x64xf32, #tpu.memory_space<vmem>>, %arg8: memref<1x1x192xf32, #tpu.memory_space<vmem>>, %arg9: memref<1x1x256xf32, #tpu.memory_space<vmem>>, %arg10: memref<1x24x64xf32, #tpu.memory_space<vmem>>) attributes {dimension_semantics = [#tpu.dimension_semantics<parallel>, #tpu.dimension_semantics<arbitrary>], iteration_bounds = array<i64: 2, 2>, scalar_prefetch = 0 : i64, scratch_operands = 0 : i64, tpu.core_type = #tpu.core_type<tc>, window_params = [{transform_indices = @transform_0, window_bounds = array<i64: 1, 24, 64>}, {transform_indices = @transform_1, window_bounds = array<i64: 1, 64, 192>}, {transform_indices = @transform_2, window_bounds = array<i64: 1, 64, 64>}, {transform_indices = @transform_3, window_bounds = array<i64: 1, 64, 256>}, {transform_indices = @transform_4, window_bounds = array<i64: 1, 256, 64>}, {transform_indices = @transform_5, window_bounds = array<i64: 1, 6, 64>}, {transform_indices = @transform_6, window_bounds = array<i64: 1, 1, 192>}, {transform_indices = @transform_7, window_bounds = array<i64: 1, 1, 256>}, {transform_indices = @transform_8, window_bounds = array<i64: 1, 24, 64>}]} {
    %c0_i32 = arith.constant 0 : i32
    %0 = arith.cmpi eq, %arg1, %c0_i32 : i32
    %1 = arith.extui %0 : i1 to i32
    %c0_i32_0 = arith.constant 0 : i32
    %2 = arith.cmpi ne, %1, %c0_i32_0 : i32
    scf.if %2 {
      %c0_62 = arith.constant 0 : index
      %c0_63 = arith.constant 0 : index
      %c0_64 = arith.constant 0 : index
      %158 = vector.load %arg2[%c0_62, %c0_63, %c0_64] : memref<1x24x64xf32, #tpu.memory_space<vmem>>, vector<1x24x64xf32>
      %c0_65 = arith.constant 0 : index
      %c0_66 = arith.constant 0 : index
      %c0_67 = arith.constant 0 : index
      %159 = vector.load %arg10[%c0_65, %c0_66, %c0_67] : memref<1x24x64xf32, #tpu.memory_space<vmem>>, vector<1x24x64xf32>
      tpu.vector_store %arg10[%c0_65, %c0_66, %c0_67], %158 {strides = array<i32>} : memref<1x24x64xf32, #tpu.memory_space<vmem>>, vector<1x24x64xf32>,
    } else {
    }
    %c0 = arith.constant 0 : index
    %c0_1 = arith.constant 0 : index
    %c0_2 = arith.constant 0 : index
    %3 = vector.load %arg10[%c0, %c0_1, %c0_2] : memref<1x24x64xf32, #tpu.memory_space<vmem>>, vector<1x24x64xf32>
    %4 = vector.shape_cast %3 : vector<1x24x64xf32> to vector<24x64xf32>
    %c0_3 = arith.constant 0 : index
    %c0_4 = arith.constant 0 : index
    %c0_5 = arith.constant 0 : index
    %5 = vector.load %arg7[%c0_3, %c0_4, %c0_5] : memref<1x6x64xf32, #tpu.memory_space<vmem>>, vector<1x6x64xf32>
    %6 = vector.shape_cast %5 : vector<1x6x64xf32> to vector<6x64xf32>
    %7 = vector.extract_strided_slice %6 {offsets = [0, 0], sizes = [1, 64], strides = [1, 1]} : vector<6x64xf32> to vector<1x64xf32>
    %8 = vector.extract_strided_slice %6 {offsets = [1, 0], sizes = [1, 64], strides = [1, 1]} : vector<6x64xf32> to vector<1x64xf32>
    %9 = vector.extract_strided_slice %6 {offsets = [2, 0], sizes = [1, 64], strides = [1, 1]} : vector<6x64xf32> to vector<1x64xf32>
    %10 = vector.extract_strided_slice %6 {offsets = [3, 0], sizes = [1, 64], strides = [1, 1]} : vector<6x64xf32> to vector<1x64xf32>
    %11 = vector.extract_strided_slice %6 {offsets = [4, 0], sizes = [1, 64], strides = [1, 1]} : vector<6x64xf32> to vector<1x64xf32>
    %12 = vector.extract_strided_slice %6 {offsets = [5, 0], sizes = [1, 64], strides = [1, 1]} : vector<6x64xf32> to vector<1x64xf32>
    %cst = arith.constant dense<0.000000e+00> : vector<24xf32>
    %13 = vector.multi_reduction <add>, %4, %cst [1] : vector<24x64xf32> to vector<24xf32>
    %14 = vector.shape_cast %13 : vector<24xf32> to vector<24x1xf32>
    %cst_6 = arith.constant 6.400000e+01 : f32
    %15 = vector.broadcast %cst_6 : f32 to vector<24x1xf32>
    %16 = arith.divf %14, %15 : vector<24x1xf32>
    %17 = vector.broadcast %16 : vector<24x1xf32> to vector<24x64xf32>
    %18 = arith.subf %4, %17 : vector<24x64xf32>
    %19 = arith.mulf %18, %18 : vector<24x64xf32>
    %cst_7 = arith.constant dense<0.000000e+00> : vector<24xf32>
    %20 = vector.multi_reduction <add>, %19, %cst_7 [1] : vector<24x64xf32> to vector<24xf32>
    %21 = vector.shape_cast %20 : vector<24xf32> to vector<24x1xf32>
    %cst_8 = arith.constant 6.400000e+01 : f32
    %22 = vector.broadcast %cst_8 : f32 to vector<24x1xf32>
    %23 = arith.divf %21, %22 : vector<24x1xf32>
    %cst_9 = arith.constant 9.99999974E-6 : f32
    %24 = vector.broadcast %cst_9 : f32 to vector<24x1xf32>
    %25 = arith.addf %23, %24 : vector<24x1xf32>
    %26 = math.rsqrt %25 : vector<24x1xf32>
    %27 = vector.broadcast %26 : vector<24x1xf32> to vector<24x64xf32>
    %28 = arith.mulf %18, %27 : vector<24x64xf32>
    %29 = vector.broadcast %7 : vector<1x64xf32> to vector<24x64xf32>
    %30 = arith.mulf %28, %29 : vector<24x64xf32>
    %31 = vector.broadcast %8 : vector<1x64xf32> to vector<24x64xf32>
    %32 = arith.addf %30, %31 : vector<24x64xf32>
    %c0_10 = arith.constant 0 : index
    %c0_11 = arith.constant 0 : index
    %c0_12 = arith.constant 0 : index
    %33 = vector.load %arg3[%c0_10, %c0_11, %c0_12] : memref<1x64x192xbf16, #tpu.memory_space<vmem>>, vector<1x64x192xbf16>
    %34 = vector.shape_cast %33 : vector<1x64x192xbf16> to vector<64x192xbf16>
    %35 = arith.truncf %32 : vector<24x64xf32> to vector<24x64xbf16>
    %cst_13 = arith.constant dense<0.000000e+00> : vector<24x192xf32>
    %36 = tpu.matmul %35, %34, %cst_13 {dimension_numbers = #tpu.dot_dimension_numbers<[1], [0], [0], [1], [0, 0, 1, 1], [], []>} : vector<24x64xbf16>, vector<64x192xbf16>, vector<24x192xf32> -> vector<24x192xf32>
    %c0_14 = arith.constant 0 : index
    %c0_15 = arith.constant 0 : index
    %c0_16 = arith.constant 0 : index
    %37 = vector.load %arg8[%c0_14, %c0_15, %c0_16] : memref<1x1x192xf32, #tpu.memory_space<vmem>>, vector<1x1x192xf32>
    %38 = vector.shape_cast %37 : vector<1x1x192xf32> to vector<1x192xf32>
    %39 = vector.broadcast %38 : vector<1x192xf32> to vector<24x192xf32>
    %40 = arith.addf %36, %39 : vector<24x192xf32>
    %41 = vector.extract_strided_slice %40 {offsets = [0, 0], sizes = [24, 64], strides = [1, 1]} : vector<24x192xf32> to vector<24x64xf32>
    %42 = vector.shape_cast %41 : vector<24x64xf32> to vector<24x4x16xf32>
    %43 = tpu.transpose %42, [1, 0, 2] : vector<24x4x16xf32> -> vector<4x24x16xf32>
    %cst_17 = arith.constant 2.500000e-01 : f32
    %44 = vector.broadcast %cst_17 : f32 to vector<4x24x16xf32>
    %45 = arith.mulf %43, %44 : vector<4x24x16xf32>
    %46 = vector.extract_strided_slice %40 {offsets = [0, 64], sizes = [24, 64], strides = [1, 1]} : vector<24x192xf32> to vector<24x64xf32>
    %47 = vector.shape_cast %46 : vector<24x64xf32> to vector<24x4x16xf32>
    %48 = tpu.transpose %47, [1, 0, 2] : vector<24x4x16xf32> -> vector<4x24x16xf32>
    %49 = vector.extract_strided_slice %40 {offsets = [0, 128], sizes = [24, 64], strides = [1, 1]} : vector<24x192xf32> to vector<24x64xf32>
    %50 = vector.shape_cast %49 : vector<24x64xf32> to vector<24x4x16xf32>
    %51 = tpu.transpose %50, [1, 0, 2] : vector<24x4x16xf32> -> vector<4x24x16xf32>
    "tpu.trace_start"() <{level = 10 : i32, message = "znd,zmd->znm"}> : () -> ()
    %cst_18 = arith.constant dense<0.000000e+00> : vector<4x24x24xf32>
    %52 = tpu.matmul %45, %48, %cst_18 {dimension_numbers = #tpu.dot_dimension_numbers<[2], [2], [1], [1], [0, 0, 0, 1, 1, 1], [0], [0]>} : vector<4x24x16xf32>, vector<4x24x16xf32>, vector<4x24x24xf32> -> vector<4x24x24xf32>
    "tpu.trace_stop"() : () -> ()
    %53 = tpu.iota {dimensions = array<i32: 2>} : vector<1x1x24xi32>
    %c17_i32 = arith.constant 17 : i32
    %54 = vector.broadcast %c17_i32 : i32 to vector<1x1x24xi32>
    %55 = arith.cmpi slt, %53, %54 : vector<1x1x24xi32>
    %cst_19 = arith.constant -1.000000e+30 : f32
    %56 = vector.shape_cast %55 : vector<1x1x24xi1> to vector<1x1x24xi1>
    %57 = vector.broadcast %56 : vector<1x1x24xi1> to vector<4x24x24xi1>
    %58 = vector.broadcast %cst_19 : f32 to vector<4x24x24xf32>
    %59 = arith.select %57, %52, %58 : vector<4x24x24xi1>, vector<4x24x24xf32>
    %cst_20 = arith.constant dense<0xFF800000> : vector<4x24xf32>
    %60 = vector.multi_reduction <maximumf>, %59, %cst_20 [2] : vector<4x24x24xf32> to vector<4x24xf32>
    %61 = vector.shape_cast %60 : vector<4x24xf32> to vector<4x24x1xf32>
    %62 = vector.broadcast %61 : vector<4x24x1xf32> to vector<4x24x24xf32>
    %63 = arith.subf %59, %62 : vector<4x24x24xf32>
    %64 = math.exp %63 : vector<4x24x24xf32>
    %cst_21 = arith.constant dense<0.000000e+00> : vector<4x24xf32>
    %65 = vector.multi_reduction <add>, %64, %cst_21 [2] : vector<4x24x24xf32> to vector<4x24xf32>
    %66 = vector.shape_cast %65 : vector<4x24xf32> to vector<4x24x1xf32>
    %67 = tpu.reciprocal %66 {approx = true} : vector<4x24x1xf32> -> vector<4x24x1xf32>
    %68 = vector.broadcast %67 : vector<4x24x1xf32> to vector<4x24x24xf32>
    %69 = arith.mulf %64, %68 : vector<4x24x24xf32>
    "tpu.trace_start"() <{level = 10 : i32, message = "znm,zmd->znd"}> : () -> ()
    %cst_22 = arith.constant dense<0.000000e+00> : vector<4x24x16xf32>
    %70 = tpu.matmul %69, %51, %cst_22 {dimension_numbers = #tpu.dot_dimension_numbers<[2], [1], [1], [2], [0, 0, 0, 1, 1, 2], [0], [0]>} : vector<4x24x24xf32>, vector<4x24x16xf32>, vector<4x24x16xf32> -> vector<4x24x16xf32>
    "tpu.trace_stop"() : () -> ()
    %71 = tpu.transpose %70, [1, 0, 2] : vector<4x24x16xf32> -> vector<24x4x16xf32>
    %72 = vector.shape_cast %71 : vector<24x4x16xf32> to vector<24x64xf32>
    %c0_23 = arith.constant 0 : index
    %c0_24 = arith.constant 0 : index
    %c0_25 = arith.constant 0 : index
    %73 = vector.load %arg4[%c0_23, %c0_24, %c0_25] : memref<1x64x64xbf16, #tpu.memory_space<vmem>>, vector<1x64x64xbf16>
    %74 = vector.shape_cast %73 : vector<1x64x64xbf16> to vector<64x64xbf16>
    %75 = arith.truncf %72 : vector<24x64xf32> to vector<24x64xbf16>
    %cst_26 = arith.constant dense<0.000000e+00> : vector<24x64xf32>
    %76 = tpu.matmul %75, %74, %cst_26 {dimension_numbers = #tpu.dot_dimension_numbers<[1], [0], [0], [1], [0, 0, 1, 1], [], []>} : vector<24x64xbf16>, vector<64x64xbf16>, vector<24x64xf32> -> vector<24x64xf32>
    %77 = vector.broadcast %11 : vector<1x64xf32> to vector<24x64xf32>
    %78 = arith.addf %76, %77 : vector<24x64xf32>
    %79 = arith.addf %4, %78 : vector<24x64xf32>
    %cst_27 = arith.constant dense<0.000000e+00> : vector<24xf32>
    %80 = vector.multi_reduction <add>, %79, %cst_27 [1] : vector<24x64xf32> to vector<24xf32>
    %81 = vector.shape_cast %80 : vector<24xf32> to vector<24x1xf32>
    %cst_28 = arith.constant 6.400000e+01 : f32
    %82 = vector.broadcast %cst_28 : f32 to vector<24x1xf32>
    %83 = arith.divf %81, %82 : vector<24x1xf32>
    %84 = vector.broadcast %83 : vector<24x1xf32> to vector<24x64xf32>
    %85 = arith.subf %79, %84 : vector<24x64xf32>
    %86 = arith.mulf %85, %85 : vector<24x64xf32>
    %cst_29 = arith.constant dense<0.000000e+00> : vector<24xf32>
    %87 = vector.multi_reduction <add>, %86, %cst_29 [1] : vector<24x64xf32> to vector<24xf32>
    %88 = vector.shape_cast %87 : vector<24xf32> to vector<24x1xf32>
    %cst_30 = arith.constant 6.400000e+01 : f32
    %89 = vector.broadcast %cst_30 : f32 to vector<24x1xf32>
    %90 = arith.divf %88, %89 : vector<24x1xf32>
    %cst_31 = arith.constant 9.99999974E-6 : f32
    %91 = vector.broadcast %cst_31 : f32 to vector<24x1xf32>
    %92 = arith.addf %90, %91 : vector<24x1xf32>
    %93 = math.rsqrt %92 : vector<24x1xf32>
    %94 = vector.broadcast %93 : vector<24x1xf32> to vector<24x64xf32>
    %95 = arith.mulf %85, %94 : vector<24x64xf32>
    %96 = vector.broadcast %9 : vector<1x64xf32> to vector<24x64xf32>
    %97 = arith.mulf %95, %96 : vector<24x64xf32>
    %98 = vector.broadcast %10 : vector<1x64xf32> to vector<24x64xf32>
    %99 = arith.addf %97, %98 : vector<24x64xf32>
    %c0_32 = arith.constant 0 : index
    %c0_33 = arith.constant 0 : index
    %c0_34 = arith.constant 0 : index
    %100 = vector.load %arg5[%c0_32, %c0_33, %c0_34] : memref<1x64x256xbf16, #tpu.memory_space<vmem>>, vector<1x64x256xbf16>
    %101 = vector.shape_cast %100 : vector<1x64x256xbf16> to vector<64x256xbf16>
    %c0_35 = arith.constant 0 : index
    %c0_36 = arith.constant 0 : index
    %c0_37 = arith.constant 0 : index
    %102 = vector.load %arg6[%c0_35, %c0_36, %c0_37] : memref<1x256x64xbf16, #tpu.memory_space<vmem>>, vector<1x256x64xbf16>
    %103 = vector.shape_cast %102 : vector<1x256x64xbf16> to vector<256x64xbf16>
    %104 = arith.truncf %99 : vector<24x64xf32> to vector<24x64xbf16>
    %cst_38 = arith.constant dense<0.000000e+00> : vector<24x256xf32>
    %105 = tpu.matmul %104, %101, %cst_38 {dimension_numbers = #tpu.dot_dimension_numbers<[1], [0], [0], [1], [0, 0, 1, 1], [], []>} : vector<24x64xbf16>, vector<64x256xbf16>, vector<24x256xf32> -> vector<24x256xf32>
    %c0_39 = arith.constant 0 : index
    %c0_40 = arith.constant 0 : index
    %c0_41 = arith.constant 0 : index
    %106 = vector.load %arg9[%c0_39, %c0_40, %c0_41] : memref<1x1x256xf32, #tpu.memory_space<vmem>>, vector<1x1x256xf32>
    %107 = vector.shape_cast %106 : vector<1x1x256xf32> to vector<1x256xf32>
    %108 = vector.broadcast %107 : vector<1x256xf32> to vector<24x256xf32>
    %109 = arith.addf %105, %108 : vector<24x256xf32>
    %cst_42 = arith.constant 5.000000e-01 : f32
    %110 = vector.broadcast %cst_42 : f32 to vector<24x256xf32>
    %111 = arith.mulf %110, %109 : vector<24x256xf32>
    %cst_43 = arith.constant 0.707106769 : f32
    %112 = vector.broadcast %cst_43 : f32 to vector<24x256xf32>
    %113 = arith.mulf %109, %112 : vector<24x256xf32>
    %cst_44 = arith.constant 0.000000e+00 : f32
    %114 = vector.broadcast %cst_44 : f32 to vector<24x256xf32>
    %115 = arith.cmpf oge, %113, %114 : vector<24x256xf32>
    %cst_45 = arith.constant 1.000000e+00 : f32
    %cst_46 = arith.constant -1.000000e+00 : f32
    %116 = vector.broadcast %cst_45 : f32 to vector<24x256xf32>
    %117 = vector.broadcast %cst_46 : f32 to vector<24x256xf32>
    %118 = arith.select %115, %116, %117 : vector<24x256xi1>, vector<24x256xf32>
    %119 = math.absf %113 : vector<24x256xf32>
    %cst_47 = arith.constant 0.327591091 : f32
    %120 = vector.broadcast %cst_47 : f32 to vector<24x256xf32>
    %121 = arith.mulf %120, %119 : vector<24x256xf32>
    %cst_48 = arith.constant 1.000000e+00 : f32
    %122 = vector.broadcast %cst_48 : f32 to vector<24x256xf32>
    %123 = arith.addf %122, %121 : vector<24x256xf32>
    %cst_49 = arith.constant 1.000000e+00 : f32
    %124 = vector.broadcast %cst_49 : f32 to vector<24x256xf32>
    %125 = arith.divf %124, %123 : vector<24x256xf32>
    %cst_50 = arith.constant 1.06140542 : f32
    %126 = vector.broadcast %cst_50 : f32 to vector<24x256xf32>
    %127 = arith.mulf %126, %125 : vector<24x256xf32>
    %cst_51 = arith.constant -1.45315206 : f32
    %128 = vector.broadcast %cst_51 : f32 to vector<24x256xf32>
    %129 = arith.addf %127, %128 : vector<24x256xf32>
    %130 = arith.mulf %129, %125 : vector<24x256xf32>
    %cst_52 = arith.constant 1.42141378 : f32
    %131 = vector.broadcast %cst_52 : f32 to vector<24x256xf32>
    %132 = arith.addf %130, %131 : vector<24x256xf32>
    %133 = arith.mulf %132, %125 : vector<24x256xf32>
    %cst_53 = arith.constant -0.284496725 : f32
    %134 = vector.broadcast %cst_53 : f32 to vector<24x256xf32>
    %135 = arith.addf %133, %134 : vector<24x256xf32>
    %136 = arith.mulf %135, %125 : vector<24x256xf32>
    %cst_54 = arith.constant 0.254829586 : f32
    %137 = vector.broadcast %cst_54 : f32 to vector<24x256xf32>
    %138 = arith.addf %136, %137 : vector<24x256xf32>
    %139 = arith.mulf %138, %125 : vector<24x256xf32>
    %cst_55 = arith.constant 0.000000e+00 : f32
    %140 = vector.broadcast %cst_55 : f32 to vector<24x256xf32>
    %141 = arith.subf %140, %119 : vector<24x256xf32>
    %142 = arith.mulf %141, %119 : vector<24x256xf32>
    %143 = math.exp %142 : vector<24x256xf32>
    %144 = arith.mulf %139, %143 : vector<24x256xf32>
    %cst_56 = arith.constant 1.000000e+00 : f32
    %145 = vector.broadcast %cst_56 : f32 to vector<24x256xf32>
    %146 = arith.subf %145, %144 : vector<24x256xf32>
    %147 = arith.mulf %118, %146 : vector<24x256xf32>
    %cst_57 = arith.constant 1.000000e+00 : f32
    %148 = vector.broadcast %cst_57 : f32 to vector<24x256xf32>
    %149 = arith.addf %148, %147 : vector<24x256xf32>
    %150 = arith.mulf %111, %149 : vector<24x256xf32>
    %151 = arith.truncf %150 : vector<24x256xf32> to vector<24x256xbf16>
    %cst_58 = arith.constant dense<0.000000e+00> : vector<24x64xf32>
    %152 = tpu.matmul %151, %103, %cst_58 {dimension_numbers = #tpu.dot_dimension_numbers<[1], [0], [0], [1], [0, 0, 1, 1], [], []>} : vector<24x256xbf16>, vector<256x64xbf16>, vector<24x64xf32> -> vector<24x64xf32>
    %153 = vector.broadcast %12 : vector<1x64xf32> to vector<24x64xf32>
    %154 = arith.addf %152, %153 : vector<24x64xf32>
    %155 = arith.addf %79, %154 : vector<24x64xf32>
    %156 = vector.shape_cast %155 : vector<24x64xf32> to vector<1x24x64xf32>
    %c0_59 = arith.constant 0 : index
    %c0_60 = arith.constant 0 : index
    %c0_61 = arith.constant 0 : index
    %157 = vector.load %arg10[%c0_59, %c0_60, %c0_61] : memref<1x24x64xf32, #tpu.memory_space<vmem>>, vector<1x24x64xf32>
    tpu.vector_store %arg10[%c0_59, %c0_60, %c0_61], %156 {strides = array<i32>} : memref<1x24x64xf32, #tpu.memory_space<vmem>>, vector<1x24x64xf32>,
    return
  }
  func.func @transform_0(%arg0: i32, %arg1: i32) -> (i32, i32, i32) {
    %c0_i32 = arith.constant 0 : i32
    %c0_i32_0 = arith.constant 0 : i32
    %c0_i32_1 = arith.constant 0 : i32
    return %arg0, %c0_i32, %c0_i32_0 : i32, i32, i32
  }
  func.func @transform_1(%arg0: i32, %arg1: i32) -> (i32, i32, i32) {
    %c0_i32 = arith.constant 0 : i32
    %c0_i32_0 = arith.constant 0 : i32
    %c0_i32_1 = arith.constant 0 : i32
    return %arg1, %c0_i32, %c0_i32_0 : i32, i32, i32
  }
  func.func @transform_2(%arg0: i32, %arg1: i32) -> (i32, i32, i32) {
    %c0_i32 = arith.constant 0 : i32
    %c0_i32_0 = arith.constant 0 : i32
    %c0_i32_1 = arith.constant 0 : i32
    return %arg1, %c0_i32, %c0_i32_0 : i32, i32, i32
  }
  func.func @transform_3(%arg0: i32, %arg1: i32) -> (i32, i32, i32) {
    %c0_i32 = arith.constant 0 : i32
    %c0_i32_0 = arith.constant 0 : i32
    %c0_i32_1 = arith.constant 0 : i32
    return %arg1, %c0_i32, %c0_i32_0 : i32, i32, i32
  }
  func.func @transform_4(%arg0: i32, %arg1: i32) -> (i32, i32, i32) {
    %c0_i32 = arith.constant 0 : i32
    %c0_i32_0 = arith.constant 0 : i32
    %c0_i32_1 = arith.constant 0 : i32
    return %arg1, %c0_i32, %c0_i32_0 : i32, i32, i32
  }
  func.func @transform_5(%arg0: i32, %arg1: i32) -> (i32, i32, i32) {
    %c0_i32 = arith.constant 0 : i32
    %c0_i32_0 = arith.constant 0 : i32
    %c0_i32_1 = arith.constant 0 : i32
    return %arg1, %c0_i32, %c0_i32_0 : i32, i32, i32
  }
  func.func @transform_6(%arg0: i32, %arg1: i32) -> (i32, i32, i32) {
    %c0_i32 = arith.constant 0 : i32
    %c0_i32_0 = arith.constant 0 : i32
    %c0_i32_1 = arith.constant 0 : i32
    return %arg1, %c0_i32, %c0_i32_0 : i32, i32, i32
  }
  func.func @transform_7(%arg0: i32, %arg1: i32) -> (i32, i32, i32) {
    %c0_i32 = arith.constant 0 : i32
    %c0_i32_0 = arith.constant 0 : i32
    %c0_i32_1 = arith.constant 0 : i32
    return %arg1, %c0_i32, %c0_i32_0 : i32, i32, i32
  }
  func.func @transform_8(%arg0: i32, %arg1: i32) -> (i32, i32, i32) {
    %c0_i32 = arith.constant 0 : i32
    %c0_i32_0 = arith.constant 0 : i32
    %c0_i32_1 = arith.constant 0 : i32
    return %arg0, %c0_i32, %c0_i32_0 : i32, i32, i32
  }
}

</mosaic_0001>

<bundles_post_ra>
// kernel: convformer_forward.3
= control target key start
LH: loop header
LB: loop body
LE: loop exit
PB: predicated region body
PF: predicated region fallthrough
CT: control target
= control target key end

     0   :  { %vm60_vm0 = vcmask 392192   ;;  %vm116_vm1 = vcmask 523264   ;;  %s203_s1 = inlined_call_operand.vmem [shape: bf16[48,64], index: 1, kind: input, shape index: {}]   ;;  %s204_s0 = inlined_call_operand.vmem [shape: bf16[32,48], index: 0, kind: input, shape index: {}]   ;;  %s205_s2 = inlined_call_operand.vmem [shape: f32[1,64], index: 2, kind: input, shape index: {}]   ;;  %s206_s3 = inlined_call_operand.vmem [shape: f32[32,64], index: 3, kind: output, shape index: {}]  }
   0x1   :  { %v148_v0 = vld [vmem:[%s203_s1] sm:$0xff]   ;;  %v149_v1 = vld [vmem:[%s203_s1 + $0x8] sm:$0xff]   ;;  %v150_v3 = vld [vmem:[%s203_s1 + $0x10] sm:$0xff]  }
   0x2   :  { %138 = vmatprep.subr.bf16.mxu0 %v148_v0  ;;  %v151_v2 = vld [vmem:[%s204_s0] sm:$0xff]   ;;  %v152_v4 = vld [vmem:[%s204_s0 + $0x8] sm:$0xff]  }
   0x3   :  { %139 = vmatpush3.bf16.msra.mxu0 %v148_v0  ;;  %144 = vmatprep.mubr.msk.bf16.mxu0 %vm60_vm0, %v151_v2  ;;  %v125_v5 = vld [vmem:[%s205_s2] ss:$0 sm:$0xff] }
   0x4   :  { %140 = vmatprep.subr.bf16.mxu0 %v149_v1 }
   0x7   :  { %141 = vmatpush3.bf16.msra.mxu0 %v149_v1 }
   0x8   :  { %142 = vmatprep.subr.bf16.mxu0 %v150_v3 }
   0xb   :  { %143 = vmatpush3.bf16.msra.mxu0 %v150_v3 }
   0xe   :  { %145 = vmatmul.mubr.msk.bf16.vlgmr.msra.gmra.mrb[0].mxu0 %vm60_vm0, %v152_v4 }
  0xe1   :  { %v146_v6 = vpop.f32.mrb[0].mxu0 }
  0xe2   :  { %v110_v7 = vadd.f32 %v146_v6, %v125_v5  ;;  %v101_v8 = vpop.f32.mrb[1].mxu0 }
  0xe3   :  { %v102_v9 = vadd.f32 %v125_v5, %v101_v8  ;;  %v147_v10 = vpop.f32.mrb[2].mxu0 }
  0xe4   :  { %119 = vst.msk [vmem:[%s206_s3 + $0x10] sm:$0xff] %vm116_vm1, %v110_v7  ;;  %v113_v11 = vadd.f32 %v147_v10, %v125_v5  ;;  %v104_v12 = vpop.f32.mrb[3].mxu0 }
  0xe5   :  { %117 = vst.msk [vmem:[%s206_s3] sm:$0xff] %vm116_vm1, %v102_v9  ;;  %v105_v13 = vadd.f32 %v125_v5, %v104_v12 }
  0xe6   :  { %120 = vst.msk [vmem:[%s206_s3 + $0x18] sm:$0xff] %vm116_vm1, %v113_v11 }
  0xe7   :  { %118 = vst.msk [vmem:[%s206_s3 + $0x8] sm:$0xff] %vm116_vm1, %v105_v13 }

// kernel: convformer_forward.5
= control target key start
LH: loop header
LB: loop body
LE: loop exit
PB: predicated region body
PF: predicated region fallthrough
CT: control target
= control target key end

     0   :  { %vm24_vm0 = vcmask 517120   ;;  %s314_s0 = inlined_call_operand.vmem [shape: f32[2,64], index: 0, kind: input, shape index: {}]   ;;  %s315_s1 = inlined_call_operand.vmem [shape: f32[1,64], index: 1, kind: input, shape index: {}]   ;;  %s316_s2 = inlined_call_operand.vmem [shape: f32[1,64], index: 2, kind: input, shape index: {}]   ;;  %s317_s3 = inlined_call_operand.vmem [shape: f32[64,4], index: 3, kind: input, shape index: {}]   ;;  %s318_s4 = inlined_call_operand.vmem [shape: f32[1,4], index: 4, kind: input, shape index: {}]   ;;  %s319_s5 = inlined_call_operand.hbm [shape: f32[2,4], index: 5, kind: output, shape index: {}]  }
   0x1   :  { %v21_v0 = vld [vmem:[%s314_s0] sm:$0x3] }
   0x2   :  { %10 = vsyncpa [#allocation3], 0  ;;  %v25_v1 = vsel %vm24_vm0, %v21_v0, 0.0  ;;  %v53_v7 = vld [vmem:[%s317_s3] sm:$0xff]  ;;  %v54_v8 = vld [vmem:[%s317_s3 + $0x8] sm:$0xff]  ;;  %v232_v12 = vmov 0.0|0.0  }
   0x3   :  { %26 = vadd.xlane.f32.xlu0 %v25_v1  ;;  %v191_v9 = vpack.c.bf16 %v54_v8, %v53_v7  ;;  %v55_v10 = vld [vmem:[%s317_s3 + $0x10] sm:$0xff]  ;;  %v56_v11 = vld [vmem:[%s317_s3 + $0x18] sm:$0xff]  ;;  %190 = vmatprep.subr.bf16.mxu0 %v232_v12  ;;  %vm233_vm1 = vmmov 0   ;;  %v234_v13 = vmov 0.0   ;;  %v57_v15 = vld [vmem:[%s317_s3 + $0x20] sm:$0xff]  ;;  %vm68_vm2 = vcmask 523264  }
   0x4   :  { %187 = vmatprep.mubr.msk.f32.mxu0 %vm233_vm1, %v234_v13  ;;  %v194_v14 = vpack.c.bf16 %v56_v11, %v55_v10  ;;  %v58_v16 = vld [vmem:[%s317_s3 + $0x28] sm:$0xff]  ;;  %v59_v18 = vld [vmem:[%s317_s3 + $0x30] sm:$0xff]  ;;  %v60_v19 = vld [vmem:[%s317_s3 + $0x38] sm:$0xff]  ;;  %s235_s15 = smov [#allocation2]   ;;  %vm142_vm3 = vcmask 25600  }
   0x5   :  { %192 = vmatpush3.bf16.msra.mxu0 %v191_v9  ;;  %v197_v17 = vpack.c.bf16 %v58_v16, %v57_v15  ;;  %v200_v20 = vpack.c.bf16 %v60_v19, %v59_v18  ;;  %v158_v25 = vld [vmem:[%s315_s1] ss:$0 sm:$0xff]  ;;  %s150_s16 = sshll.u32 %s235_s15, 4  ;;  %s151_s16 = int_to_ptr.vmem [resolvable:$true] %s150_s16 }
   0x6   :  { %193 = vmatprep.subr.bf16.mxu0 %v232_v12  ;;  %v159_v27 = vld [vmem:[%s316_s2] ss:$0 sm:$0xff]  ;;  %s208_s1 = scalar_lea.vmem %s151_s16, 32  ;;  %p213_p1 = scmp.lt.s32.totalorder %s151_s16, %s151_s16 }
   0x7   :  { %v160_v30 = vld [vmem:[%s318_s4] ss:$0 sm:$0xff]  ;;  %p209_p0 = scmp.ne.s32.totalorder %s151_s16, %s208_s1  ;;  %p214_p2 = scmp.lt.s32.totalorder %s208_s1, %s208_s1 }
   0x9   :  { %195 = vmatpush3.bf16.msra.mxu0 %v194_v14  ;;  %p215_p3 = por %p214_p2, %p213_p1 }
   0xa   :  { %196 = vmatprep.subr.bf16.mxu0 %v232_v12 }
   0xb   :  { %p216_p4 = pnand %p215_p3, %p209_p0 }
   0xd   :  { %198 = vmatpush3.bf16.msra.mxu0 %v197_v17 }
   0xe   :  { %199 = vmatprep.subr.bf16.mxu0 %v232_v12 }
  0x11   :  { %201 = vmatpush3.bf16.msra.mxu0 %v200_v20 }
  0x90   :  { %v27_v2 = vpop.xlane.xlu0 %26 }
  0x91   :  { %v29_v3 = vmul.f32 0.015625, %v27_v2 }
  0x93   :  { %v30_v4 = vsub.f32 %v21_v0, %v29_v3 }
  0x95   :  { %v31_v5 = vmul.f32 %v30_v4, %v30_v4 }
  0x97   :  { %v32_v6 = vsel %vm24_vm0, %v31_v5, 0.0 }
  0x98   :  { %33 = vadd.xlane.f32.xlu0 %v32_v6 }
 0x125   :  { %v34_v21 = vpop.xlane.xlu0 %33 }
 0x126   :  { %v35_v22 = vmul.f32 0.015625, %v34_v21 }
 0x128   :  { %v36_v23 = vadd.f32 1e-05, %v35_v22 }
 0x12a   :  { %206 = vrsqrt.f32 %v36_v23 }
 0x134   :  { %v207_v24 = vpop.eup %206 }
 0x135   :  { %v38_v26 = vmul.f32 %v207_v24, %v30_v4 }
 0x137   :  { %v45_v28 = vmul.f32 %v158_v25, %v38_v26 }
 0x139   :  { %v52_v29 = vadd.f32 %v159_v27, %v45_v28 }
 0x13b   :  { %188 = vmatmul.mubr.msk.f32.vlgmr.msra.gmra.mrb[0].mxu0 %vm68_vm2, %v52_v29 }
 0x20e   :  { %v138_v31 = vpop.f32.mrb[0].mxu0 }
 0x20f   :  { %v139_v32 = vadd.f32 %v160_v30, %v138_v31  ;;  %v189_v33 = vpop.f32.mrb[1].mxu0 }
 0x211   :  { %143 = vst.msk [vmem:[#allocation2] sm:$0x3] %vm142_vm3, %v139_v32 }
 0x212   :  { %219 = shalt.err (!%p216_p4)
}
 0x213   :  { %s220_s18 = scalar_lea.hbm %s319_s5, 32 }
 0x214   :  { %p221_p5 = scmp.ne.s32.totalorder %s319_s5, %s220_s18  ;;  %p224_p6 = scmp.lt.u32.totalorder %s220_s18, %s319_s5 }
 0x216   :  { %p226_p7 = pnand %p224_p6, %p221_p5 }
 0x218   :  { %229 = shalt.err (!%p226_p7)
}
 0x219   :  { %153 = dma.vmem_to_hbm [thread:$0]  %s151_s16, 32, %s319_s5, [#allocation3]  }
 0x21a   :  { %230 = dma.done.wait [#allocation3], 32  }
 0x21b   :  { %231 = vsyncadd [#allocation3], 4294967264 }
 0x21c   :  { %157 = vsyncpa [#allocation3], 1 }

// kernel: convformer_forward.4
= control target key start
LH: loop header
LB: loop body
LE: loop exit
PB: predicated region body
PF: predicated region fallthrough
CT: control target
= control target key end

     0   :  { %s4764_s27 = smov 0   ;;  %s4766_s28 = smov 0   ;;  %s5695_s0 = inlined_call_operand.vmem [shape: f32[2,24,64], index: 0, kind: input, shape index: {}, may-alias: {0,8}]   ;;  %s5696_s1 = inlined_call_operand.vmem [shape: bf16[2,64,192], index: 1, kind: input, shape index: {}]   ;;  %s5697_s2 = inlined_call_operand.vmem [shape: bf16[2,64,64], index: 2, kind: input, shape index: {}]   ;;  %s5698_s3 = inlined_call_operand.vmem [shape: bf16[2,64,256], index: 3, kind: input, shape index: {}]   ;;  %s5699_s4 = inlined_call_operand.vmem [shape: bf16[2,256,64], index: 4, kind: input, shape index: {}]   ;;  %s5700_s5 = inlined_call_operand.vmem [shape: f32[2,6,64], index: 5, kind: input, shape index: {}]   ;;  %s5701_s6 = inlined_call_operand.vmem [shape: f32[2,1,192], index: 6, kind: input, shape index: {}]   ;;  %s5702_s7 = inlined_call_operand.vmem [shape: f32[2,1,256], index: 7, kind: input, shape index: {}]   ;;  %s5703_s8 = inlined_call_operand.vmem [shape: f32[2,24,64], index: 8, kind: output, shape index: {}, may-alias: {0,8}]  }
   0x1   :  { %5708 = sst [smem:[#allocation5_spill]] %s5695_s0  ;;  %s4768_s29 = smov 0  }
   0x2   :  { %5709 = sst [smem:[#allocation6_spill]] %s5696_s1  ;;  %s4770_s30 = smov 0  }
   0x3   :  { %5710 = sst [smem:[#allocation7_spill]] %s5697_s2  ;;  %s4772_s9 = smov 0  }
   0x4 LB: > { %5711 = sst [smem:[#allocation2_spill]] %s4699_s30  ;;  %s27_s10 = sadd.s32 1, %s4695_s29  ;;  %s4703_s9 = sphi %s4772_s9, %s18_s9   ;;  %s4699_s30 = sphi %s4770_s30, %s5724_s30   ;;  %s4695_s29 = sphi %s4768_s29, %s5726_s29   ;;  %s4691_s28 = sphi %s4766_s28, %s5722_s28   ;;  %s4687_s27 = sphi %s4764_s27, %s5725_s27  }
   0x5   : > { %s30_s11 = sadd.s32 1, %s4699_s30  ;;  %p28_p0 = scmp.ge.s32.totalorder %s27_s10, 2 }
   0x6   : > { %p4098_p1 = scmp.ge.s32.totalorder %s4703_s9, 1  ;;  %p341_p2 = scmp.lt.s32.totalorder %s4703_s9, 5 }
   0x7   : > { %s5728_s10 = smov (%p28_p0, %s27_s10), 0  ;;  %s5730_s11 = smov (!%p28_p0, %s30_s11), %s4699_s30 }
   0x8   : > { %5712 = sst [smem:[#allocation3_spill]] %s5728_s10  ;;  %p342_p3 = pnand %p4098_p1, %p341_p2 }
   0x9   : > { %p32_p4 = scmp.ge.s32.totalorder %s5730_s11, 2  ;;  %p407_p5 = scmp.lt.s32.totalorder (!%p342_p3), %s4691_s28, 1 }
   0xa   : > { %345 = sbr.rel (%p342_p3) target bundleno = 2811 (0xafb), region = 52  ;;  %p412_p6 = scmp.lt.s32.totalorder (!%p342_p3), %s4687_s27, 1 }
   0xb   : > { %s5732_s11 = smov (%p32_p4, %s5730_s11), 0  ;;  %s5714_s0 = sld [smem:[#allocation5_spill]] (!%p342_p3) }
   0xc   : > { %5713 = sst [smem:[#allocation4_spill]] %s5732_s11  ;;  %s5715_s1 = sld [smem:[#allocation6_spill]] (!%p342_p3) }
   0xd   : > { %s5716_s2 = sld [smem:[#allocation7_spill]] (!%p342_p3)  ;;  %p4112_p7 = scmp.ne.s32.totalorder (!%p342_p3), %s4687_s27, 0 }
  0x11   : > { %s5734_s28 = smov (!%p407_p5, %s4691_s28), 1  ;;  %vm457_vm0 = vcmask (!%p4112_p7), 523264  }
  0x12   : > { %s413_s12 = scalar_select %p412_p6, %s4687_s27, 1 }
  0x13   : > { %s4463_s13 = smul.u32 24, %s5734_s28 }
  0x14   : > { %s4217_s14 = sshll.u32 %s413_s12, 6  ;;  %s4218_s15 = sshll.u32 %s413_s12, 5 }
  0x15   : > { %s411_s18 = scalar_lea.vmem %s5714_s0, %s4463_s13  ;;  %s4804_s21 = scalar_lea.vmem %s5715_s1, %s4217_s14 }
  0x16   : > { %s4809_s24 = scalar_lea.vmem %s5716_s2, %s4218_s15  ;;  %s4814_s28 = scalar_lea.vmem %s5698_s3, %s4217_s14  ;;  %v454_v0 = vld [vmem:[%s411_s18] sm:$0xff] (!%p4112_p7)  ;;  %v455_v1 = vld [vmem:[%s411_s18 + $0x8] sm:$0xff] (!%p4112_p7)  ;;  %v456_v2 = vld [vmem:[%s411_s18 + $0x10] sm:$0xff] (!%p4112_p7) }
  0x17   : > { %s4220_s11 = sshll.u32 %s413_s12, 7  ;;  %s4108_s10 = sshll.u32 %s413_s12, 3 }
  0x18   : > { %s4819_s17 = scalar_lea.vmem %s5699_s4, %s4220_s11  ;;  %s4824_s0 = scalar_lea.vmem %s5700_s5, %s4108_s10 }
  0x19   : > { %s4109_s22 = sshll.u32 %s413_s12, 1  ;;  %s4829_s1 = scalar_lea.vmem %s5703_s8, %s4463_s13 }
  0x1a   : > { %s4834_s26 = scalar_lea.vmem %s5701_s6, %s4109_s22  ;;  %s4839_s11 = scalar_lea.vmem %s5702_s7, %s4109_s22  ;;  %458 = vst.msk [vmem:[%s4829_s1] sm:$0xff] (!%p4112_p7), %vm457_vm0, %v454_v0  ;;  %459 = vst.msk [vmem:[%s4829_s1 + $0x8] sm:$0xff] (!%p4112_p7), %vm457_vm0, %v455_v1 }
  0x1b   : > { %453 = sbr.rel (%p4112_p7) target bundleno = 34 (0x22), region = 56  ;;  %460 = vst.msk [vmem:[%s4829_s1 + $0x10] sm:$0xff] (!%p4112_p7), %vm457_vm0, %v456_v2 }
  0x22 PF: > { %v461_v3 = vld [vmem:[%s4829_s1] sm:$0xff]  ;;  %vm465_vm1 = vcmask 523264   ;;  %v463_v4 = vld [vmem:[%s4829_s1 + $0x10] sm:$0xff]  ;;  %v462_v5 = vld [vmem:[%s4829_s1 + $0x8] sm:$0xff]  ;;  %v5705_v32 = vmov 0   ;;  %v5707_v40 = vlaneseq  ;;  %s4706_s2 = smov 96  }
  0x23   : > { %v466_v6 = vsel %vm465_vm1, %v461_v3, 0.0  ;;  %v472_v7 = vsel %vm465_vm1, %v463_v4, 0.0  ;;  %v469_v8 = vsel %vm465_vm1, %v462_v5, 0.0  ;;  %v4533_v24 = vld [vmem:[%s4804_s21 + $0x4] ss:$8 sps:$4 sm:$0xff]   ;;  %620 = vmatprep.mubr.bf16.mxu0 %v5705_v32  ;;  %s4707_s27 = smov 112  }
  0x24   : > { %467 = vadd.xlane.f32.xlu0 %v466_v6  ;;  %473 = vadd.xlane.f32.xlu1 %v472_v7  ;;  %v4535_v25 = vld [vmem:[%s4804_s21] ss:$8 sps:$4 sm:$0xff]   ;;  %v4536_v26 = vld [vmem:[%s4804_s21 + $0x14] ss:$8 sps:$4 sm:$0xff]   ;;  %v4538_v27 = vld [vmem:[%s4804_s21 + $0x10] ss:$8 sps:$4 sm:$0xff]  }
  0x25   : > { %588 = vmatprep.subr.bf16.mxu0 %v4533_v24  ;;  %v4539_v28 = vld [vmem:[%s4804_s21 + $0x24] ss:$8 sps:$4 sm:$0xff]   ;;  %v4541_v29 = vld [vmem:[%s4804_s21 + $0x20] ss:$8 sps:$4 sm:$0xff]   ;;  %v4542_v30 = vld [vmem:[%s4804_s21 + $0x34] ss:$8 sps:$4 sm:$0xff]  }
  0x26   : > { %589 = vmatpush1.bf16.msra.mxu0 %v4535_v25  ;;  %v4544_v31 = vld [vmem:[%s4804_s21 + $0x30] ss:$8 sps:$4 sm:$0xff]   ;;  %v4864_v43 = vshrl.u32 %v5707_v40, 7  ;;  %v464_v45 = vld [vmem:[%s4824_s0] sm:$0x3f]  ;;  %s4708_s10 = smov 80  }
  0x27   : > { %590 = vmatprep.subr.bf16.mxu0 %v4536_v26  ;;  %v4879_v63 = vld [vmem:[%s4834_s26] sm:$0x3]  ;;  %s4709_s12 = smov 64   ;;  %vm4713_vm2 = vmmov 0   ;;  %vm1971_vm3 = vcmask 130048   ;;  %vm2381_vm6 = vcmask 195584  }
  0x28   : > { %470 = vadd.xlane.f32.xlu0 %v469_v8  ;;  %v4867_v44 = vsub.s32 0, %v4864_v43  ;;  %v4872_v49 = vsub.s32 1, %v4864_v43  ;;  %vm5080_vm4 = vmpackc.low %vm1971_vm3, %vm1971_vm3  ;;  %s4715_s13 = smov 32   ;;  %s4716_s18 = smov 16   ;;  %vm3317_vm7 = vcmask 261120   ;;  %vm3321_vm8 = vcmask 392192  }
  0x29   : > { %s4717_s21 = smov 48  }
  0x2a   : > { %591 = vmatpush1.bf16.msra.mxu0 %v4538_v27  ;;  %v509_v48 = vrot.slane %v464_v45, %v4867_v44  ;;  %v516_v54 = vrot.slane %v464_v45, %v4872_v49  ;;  %v535_v0 = vrot.slane %v4879_v63, %v4867_v44 }
  0x2b   : > { %592 = vmatprep.subr.bf16.mxu0 %v4539_v28 }
  0x2e   : > { %593 = vmatpush1.bf16.msra.mxu0 %v4541_v29 }
  0x2f   : > { %594 = vmatprep.subr.bf16.mxu0 %v4542_v30 }
  0x32   : > { %595 = vmatpush1.bf16.msra.mxu0 %v4544_v31 }
  0xb1   : > { %v468_v9 = vpop.xlane.xlu0 %467  ;;  %v474_v10 = vpop.xlane.xlu1 %473 }
  0xb2   : > { %v476_v11 = vmul.f32 0.015625, %v468_v9  ;;  %v478_v12 = vmul.f32 0.015625, %v474_v10 }
  0xb4   : > { %v479_v13 = vsub.f32 %v461_v3, %v476_v11  ;;  %v481_v14 = vsub.f32 %v463_v4, %v478_v12  ;;  %v4710_v12 = vmov 1983009808  }
  0xb5   : > { %v471_v15 = vpop.xlane.xlu0 %470 }
  0xb6   : > { %v477_v16 = vmul.f32 0.015625, %v471_v15  ;;  %v482_v17 = vmul.f32 %v479_v13, %v479_v13  ;;  %v484_v18 = vmul.f32 %v481_v14, %v481_v14 }
  0xb8   : > { %v480_v19 = vsub.f32 %v462_v5, %v477_v16  ;;  %v485_v20 = vsel %vm465_vm1, %v482_v17, 0.0  ;;  %v491_v21 = vsel %vm465_vm1, %v484_v18, 0.0 }
  0xb9   : > { %486 = vadd.xlane.f32.xlu1 %v485_v20 }
  0xba   : > { %v483_v22 = vmul.f32 %v480_v19, %v480_v19 }
  0xbc   : > { %v488_v23 = vsel %vm465_vm1, %v483_v22, 0.0 }
  0xbd   : > { %492 = vadd.xlane.f32.xlu1 %v491_v21  ;;  %489 = vadd.xlane.f32.xlu0 %v488_v23 }
 0x146   : > { %v487_v33 = vpop.xlane.xlu1 %486 }
 0x147   : > { %v494_v34 = vmul.f32 0.015625, %v487_v33 }
 0x149   : > { %v497_v35 = vadd.f32 1e-05, %v494_v34 }
 0x14a   : > { %v493_v36 = vpop.xlane.xlu1 %492  ;;  %v490_v37 = vpop.xlane.xlu0 %489 }
 0x14b   : > { %4577 = vrsqrt.f32 %v497_v35  ;;  %v496_v38 = vmul.f32 0.015625, %v493_v36  ;;  %v495_v39 = vmul.f32 0.015625, %v490_v37 }
 0x14d   : > { %v499_v41 = vadd.f32 1e-05, %v496_v38  ;;  %v498_v42 = vadd.f32 1e-05, %v495_v39 }
 0x14f   : > { %4579 = vrsqrt.f32 %v499_v41 }
 0x150   : > { %4581 = vrsqrt.f32 %v498_v42 }
 0x155   : > { %v4578_v46 = vpop.eup %4577 }
 0x156   : > { %v503_v47 = vmul.f32 %v4578_v46, %v479_v13  ;;  %v672_v13 = vunpack.c.l.s4 %v4710_v12 }
 0x158   : > { %v510_v53 = vmul.f32 %v509_v48, %v503_v47  ;;  %v673_v16 = vunpack.c.0.s8 %v672_v13 }
 0x159   : > { %v4580_v50 = vpop.eup %4579 }
 0x15a   : > { %v4582_v51 = vpop.eup %4581  ;;  %v505_v56 = vmul.f32 %v4580_v50, %v481_v14  ;;  %v517_v57 = vadd.f32 %v516_v54, %v510_v53  ;;  %v4711_v14 = vmov 1934713408   ;;  %v4907_v20 = vsub.s32 %v673_v16, %v4864_v43 }
 0x15b   : > { %v504_v52 = vmul.f32 %v4582_v51, %v480_v19  ;;  %v704_v15 = vunpack.c.l.s4 %v4711_v14 }
 0x15c   : > { %v512_v60 = vmul.f32 %v509_v48, %v505_v56 }
 0x15d   : > { %v511_v55 = vmul.f32 %v509_v48, %v504_v52  ;;  %v705_v19 = vunpack.c.0.s8 %v704_v15 }
 0x15e   : > { %v519_v61 = vadd.f32 %v516_v54, %v512_v60 }
 0x15f   : > { %v518_v58 = vadd.f32 %v516_v54, %v511_v55  ;;  %v4912_v27 = vsub.s32 %v705_v19, %v4864_v43 }
 0x160   : > { %v529_v62 = vpack.c.bf16 %v519_v61, %v519_v61 }
 0x161   : > { %v528_v59 = vpack.c.bf16 %v518_v58, %v517_v57 }
 0x163   : > { %4121 = vmatmul.mubr.msk.bf16.vlgmr.msra.gmra.mrb[0].mxu0 %vm465_vm1, %v528_v59 }
 0x164   : > { %630 = vmatprep.mubr.bf16.mxu0 %v5705_v32 }
 0x16b   : > { %4122 = vmatmul.mubr.msk.bf16.gmra.mrb[4].mxu0 %vm465_vm1, %v529_v62 }
 0x236   : > { %v622_v1 = vpop.f32.mrb[0].mxu0 }
 0x237   : > { %v623_v2 = vadd.f32 %v622_v1, %v535_v0  ;;  %v4883_v3 = vpop.f32.mrb[1].mxu0 }
 0x238   : > { %v626_v4 = vpop.f32.mrb[2].mxu0 }
 0x239   : > { %v4885_v5 = vpop.f32.mrb[3].mxu0  ;;  %651 = vrot.lane.b32.xlu1 %v623_v2, %s4706_s2  ;;  %642 = vrot.lane.b32.xlu0 %v623_v2, %s4707_s27  ;;  %v627_v6 = vadd.f32 %v626_v4, %v535_v0 }
 0x23d   : > { %644 = vrot.lane.b32.xlu1 %v627_v6, %s4707_s27  ;;  %660 = vrot.lane.b32.xlu0 %v623_v2, %s4708_s10 }
 0x23e   : > { %v632_v7 = vpop.f32.mrb[4].mxu0 }
 0x23f   : > { %v4891_v8 = vadd.f32 %v632_v7, %v535_v0  ;;  %v4893_v9 = vpop.f32.mrb[5].mxu0 }
 0x240   : > { %v636_v10 = vpop.f32.mrb[6].mxu0 }
 0x241   : > { %v637_v11 = vpop.f32.mrb[7].mxu0  ;;  %653 = vrot.lane.b32.xlu1 %v627_v6, %s4706_s2  ;;  %646 = vrot.lane.b32.xlu0 %v4891_v8, %s4707_s27 }
 0x245   : > { %662 = vrot.lane.b32.xlu1 %v627_v6, %s4708_s10  ;;  %664 = vrot.lane.b32.xlu0 %v4891_v8, %s4708_s10 }
 0x249   : > { %655 = vrot.lane.b32.xlu1 %v4891_v8, %s4706_s2  ;;  %1091 = vrot.lane.b32.xlu0 %v627_v6, %s4709_s12 }
 0x24d   : > { %1089 = vrot.lane.b32.xlu1 %v623_v2, %s4709_s12 }
 0x2ab   : > { %v652_v17 = vpop.permute.xlu1 %651  ;;  %v643_v18 = vpop.permute.xlu0 %642 }
 0x2ac   : > { %1095 = vrot.lane.b32.xlu1 %v643_v18, %s4709_s12  ;;  %v669_v21 = vcombine.low %v623_v2, %v652_v17  ;;  %v670_v22 = vcombine.high %v623_v2, %v652_v17 }
 0x2ae   : > { %v677_v28 = vrot.slane %v669_v21, %v4907_v20  ;;  %v684_v29 = vrot.slane %v670_v22, %v4907_v20 }
 0x2af   : > { %v645_v23 = vpop.permute.xlu1 %644  ;;  %v661_v24 = vpop.permute.xlu0 %660 }
 0x2b0   : > { %v685_v25 = vcombine.low %v643_v18, %v661_v24  ;;  %v686_v26 = vcombine.high %v643_v18, %v661_v24  ;;  %1097 = vrot.lane.b32.xlu0 %v645_v23, %s4709_s12  ;;  %1101 = vrot.lane.b32.xlu1 %v652_v17, %s4709_s12 }
 0x2b2   : > { %v693_v30 = vrot.slane %v685_v25, %v4907_v20  ;;  %v700_v31 = vrot.slane %v686_v26, %v4907_v20 }
 0x2b3   : > { %v654_v33 = vpop.permute.xlu1 %653  ;;  %v647_v34 = vpop.permute.xlu0 %646 }
 0x2b4   : > { %v701_v35 = vcombine.low %v677_v28, %v693_v30  ;;  %v702_v36 = vcombine.high %v677_v28, %v693_v30  ;;  %v717_v37 = vcombine.low %v684_v29, %v700_v31  ;;  %v718_v38 = vcombine.high %v684_v29, %v700_v31  ;;  %1103 = vrot.lane.b32.xlu0 %v654_v33, %s4709_s12 }
 0x2b5   : > { %v737_v39 = vcombine.low %v627_v6, %v654_v33  ;;  %v738_v41 = vcombine.high %v627_v6, %v654_v33  ;;  %1107 = vrot.lane.b32.xlu1 %v661_v24, %s4709_s12 }
 0x2b6   : > { %v709_v42 = vrot.slane %v701_v35, %v4912_v27  ;;  %v716_v45 = vrot.slane %v702_v36, %v4912_v27  ;;  %v725_v46 = vrot.slane %v717_v37, %v4912_v27  ;;  %v732_v47 = vrot.slane %v718_v38, %v4912_v27 }
 0x2b7   : > { %v745_v48 = vrot.slane %v737_v39, %v4907_v20  ;;  %v752_v50 = vrot.slane %v738_v41, %v4907_v20  ;;  %v663_v51 = vpop.permute.xlu1 %662  ;;  %v665_v52 = vpop.permute.xlu0 %664 }
 0x2b8   : > { %v873_v53 = vcombine.low %v709_v42, %v716_v45  ;;  %v4123_v54 = vcombine.high %v709_v42, %v716_v45  ;;  %v889_v55 = vcombine.low %v725_v46, %v732_v47  ;;  %v4124_v56 = vcombine.high %v725_v46, %v732_v47  ;;  %1109 = vrot.lane.b32.xlu0 %v663_v51, %s4709_s12 }
 0x2b9   : > { %v753_v57 = vcombine.low %v645_v23, %v663_v51  ;;  %v754_v58 = vcombine.high %v645_v23, %v663_v51  ;;  %v821_v59 = vcombine.low %v647_v34, %v665_v52  ;;  %v822_v60 = vcombine.high %v647_v34, %v665_v52  ;;  %1093 = vrot.lane.b32.xlu1 %v4891_v8, %s4709_s12 }
 0x2ba   : > { %v880_v61 = vrot.slane %v873_v53, %v4907_v20  ;;  %v888_v62 = vrot.slane %v4123_v54, %v4907_v20  ;;  %v4932_v0 = vrot.slane %v889_v55, %v4907_v20  ;;  %v904_v1 = vrot.slane %v4124_v56, %v4907_v20 }
 0x2bb   : > { %v761_v2 = vrot.slane %v753_v57, %v4907_v20  ;;  %v768_v4 = vrot.slane %v754_v58, %v4907_v20  ;;  %v829_v6 = vrot.slane %v821_v59, %v4907_v20  ;;  %v836_v7 = vrot.slane %v822_v60, %v4907_v20  ;;  %v656_v10 = vpop.permute.xlu1 %655 }
 0x2bc   : > { %v906_v11 = vcombine.high %v880_v61, %v888_v62  ;;  %v922_v12 = vcombine.high %v4932_v0, %v904_v1  ;;  %v805_v13 = vcombine.low %v4891_v8, %v656_v10  ;;  %v806_v14 = vcombine.high %v4891_v8, %v656_v10  ;;  %1099 = vrot.lane.b32.xlu0 %v647_v34, %s4709_s12 }
 0x2bd   : > { %v769_v15 = vcombine.low %v745_v48, %v761_v2  ;;  %v770_v16 = vcombine.high %v745_v48, %v761_v2  ;;  %v785_v17 = vcombine.low %v752_v50, %v768_v4  ;;  %v786_v18 = vcombine.high %v752_v50, %v768_v4  ;;  %1105 = vrot.lane.b32.xlu1 %v656_v10, %s4709_s12 }
 0x2be   : > { %v4945_v19 = vrot.slane %v906_v11, %v4912_v27  ;;  %v4948_v21 = vrot.slane %v922_v12, %v4912_v27  ;;  %v813_v22 = vrot.slane %v805_v13, %v4907_v20  ;;  %v820_v23 = vrot.slane %v806_v14, %v4907_v20 }
 0x2bf   : > { %v777_v8 = vrot.slane %v769_v15, %v4912_v27  ;;  %v784_v24 = vrot.slane %v770_v16, %v4912_v27  ;;  %v793_v25 = vrot.slane %v785_v17, %v4912_v27  ;;  %v800_v26 = vrot.slane %v786_v18, %v4912_v27 }
 0x2c0   : > { %v837_v28 = vcombine.low %v813_v22, %v829_v6  ;;  %v838_v29 = vcombine.high %v813_v22, %v829_v6  ;;  %v853_v30 = vcombine.low %v820_v23, %v836_v7  ;;  %v854_v31 = vcombine.high %v820_v23, %v836_v7  ;;  %1111 = vrot.lane.b32.xlu0 %v665_v52, %s4709_s12 }
 0x2c1   : > { %v941_v33 = vcombine.low %v777_v8, %v784_v24  ;;  %v4125_v34 = vcombine.high %v777_v8, %v784_v24  ;;  %v957_v35 = vcombine.low %v793_v25, %v800_v26  ;;  %v4126_v36 = vcombine.high %v793_v25, %v800_v26 }
 0x2c2   : > { %v845_v37 = vrot.slane %v837_v28, %v4912_v27  ;;  %v852_v38 = vrot.slane %v838_v29, %v4912_v27  ;;  %v861_v39 = vrot.slane %v853_v30, %v4912_v27  ;;  %v868_v41 = vrot.slane %v854_v31, %v4912_v27 }
 0x2c3   : > { %v948_v42 = vrot.slane %v941_v33, %v4907_v20  ;;  %v956_v45 = vrot.slane %v4125_v34, %v4907_v20  ;;  %v964_v46 = vrot.slane %v957_v35, %v4907_v20  ;;  %v972_v47 = vrot.slane %v4126_v36, %v4907_v20  ;;  %v1090_v36 = vpop.permute.xlu1 %1089 }
 0x2c4   : > { %v1009_v48 = vcombine.low %v845_v37, %v852_v38  ;;  %v4127_v50 = vcombine.high %v845_v37, %v852_v38  ;;  %v1025_v51 = vcombine.low %v861_v39, %v868_v41  ;;  %v4128_v52 = vcombine.high %v861_v39, %v868_v41  ;;  %v1092_v37 = vpop.permute.xlu0 %1091 }
 0x2c5   : > { %v905_v53 = vcombine.low %v880_v61, %v888_v62  ;;  %v4712_v58 = vmov 0.0|0.0   ;;  %v921_v60 = vcombine.low %v4932_v0, %v904_v1  ;;  %v973_v2 = vcombine.low %v948_v42, %v956_v45 }
 0x2c6   : > { %v1016_v54 = vrot.slane %v1009_v48, %v4907_v20  ;;  %v1024_v55 = vrot.slane %v4127_v50, %v4907_v20  ;;  %v1032_v56 = vrot.slane %v1025_v51, %v4907_v20  ;;  %v1040_v57 = vrot.slane %v4128_v52, %v4907_v20  ;;  %4435 = vmatprep.subr.bf16.mxu1 %v4712_v58 }
 0x2c7   : > { %v4971_v59 = vrot.slane %v905_v53, %v4912_v27  ;;  %v989_v4 = vcombine.low %v964_v46, %v972_v47  ;;  %4451 = vmatprep.subr.bf16.mxu0 %v4712_v58  ;;  %v939_v6 = vcombine.low %v4945_v19, %v4948_v21  ;;  %v974_v7 = vcombine.high %v948_v42, %v956_v45 }
 0x2c8   : > { %v1041_v61 = vcombine.low %v1016_v54, %v1024_v55  ;;  %v1057_v62 = vcombine.low %v1032_v56, %v1040_v57  ;;  %v4978_v10 = vrot.slane %v921_v60, %v4912_v27  ;;  %v4981_v11 = vrot.slane %v973_v2, %v4912_v27 }
 0x2c9   : > { %v4984_v12 = vrot.slane %v989_v4, %v4912_v27  ;;  %v4714_v0 = vmov 0.0   ;;  %v4995_v14 = vrot.slane %v974_v7, %v4912_v27  ;;  %v990_v8 = vcombine.high %v964_v46, %v972_v47 }
 0x2ca   : > { %4309 = vmatprep.mubr.msk.f32.mxu1 %vm4713_vm2, %v4714_v0  ;;  %v4989_v1 = vrot.slane %v1041_v61, %v4912_v27  ;;  %v4992_v13 = vrot.slane %v1057_v62, %v4912_v27  ;;  %4369 = vmatprep.mubr.msk.f32.mxu0 %vm4713_vm2, %v4714_v0  ;;  %v937_v15 = vcombine.low %v4971_v59, %v4978_v10 }
 0x2cb   : > { %v938_v16 = vcombine.high %v4971_v59, %v4978_v10  ;;  %v1005_v17 = vcombine.low %v4981_v11, %v4984_v12  ;;  %v1006_v18 = vcombine.high %v4981_v11, %v4984_v12  ;;  %v1042_v24 = vcombine.high %v1016_v54, %v1024_v55 }
 0x2cc   : > { %v1073_v22 = vcombine.low %v4989_v1, %v4992_v13  ;;  %v1074_v23 = vcombine.high %v4989_v1, %v4992_v13  ;;  %v5012_v25 = vrot.slane %v990_v8, %v4912_v27  ;;  %v1058_v28 = vcombine.high %v1032_v56, %v1040_v57 }
 0x2cd   : > { %v5015_v26 = vrot.slane %v1042_v24, %v4912_v27  ;;  %v940_v29 = vcombine.high %v4945_v19, %v4948_v21  ;;  %v1083_v12 = vmul.f32 0.25, %v939_v6 }
 0x2ce   : > { %v1007_v30 = vcombine.low %v4995_v14, %v5012_v25  ;;  %v1008_v31 = vcombine.high %v4995_v14, %v5012_v25  ;;  %v5024_v33 = vrot.slane %v1058_v28, %v4912_v27 }
 0x2d0   : > { %v1075_v34 = vcombine.low %v5015_v26, %v5024_v33  ;;  %v1084_v1 = vmul.f32 0.25, %v1007_v30  ;;  %v1087_v30 = vmul.f32 0.25, %v1008_v31  ;;  %v5719_v19 = vcombine.high %v5015_v26, %v5024_v33 }
 0x2d2   : > { %v1085_v6 = vmul.f32 0.25, %v1075_v34  ;;  %v1088_v21 = vmul.f32 0.25, %v5719_v19 }
 0x31e   : > { %v1096_v38 = vpop.permute.xlu1 %1095 }
 0x322   : > { %v1102_v39 = vpop.permute.xlu1 %1101  ;;  %v1098_v41 = vpop.permute.xlu0 %1097 }
 0x323   : > { %v1125_v42 = vcombine.low %v1090_v36, %v1102_v39  ;;  %v1126_v45 = vcombine.high %v1090_v36, %v1102_v39 }
 0x325   : > { %v1133_v53 = vrot.slane %v1125_v42, %v4907_v20  ;;  %v1140_v54 = vrot.slane %v1126_v45, %v4907_v20 }
 0x326   : > { %v1104_v46 = vpop.permute.xlu0 %1103 }
 0x327   : > { %v1108_v47 = vpop.permute.xlu1 %1107  ;;  %v1193_v51 = vcombine.low %v1092_v37, %v1104_v46  ;;  %v1194_v52 = vcombine.high %v1092_v37, %v1104_v46 }
 0x328   : > { %v1141_v48 = vcombine.low %v1096_v38, %v1108_v47  ;;  %v1142_v50 = vcombine.high %v1096_v38, %v1108_v47 }
 0x329   : > { %v1201_v24 = vrot.slane %v1193_v51, %v4907_v20  ;;  %v1208_v28 = vrot.slane %v1194_v52, %v4907_v20 }
 0x32a   : > { %v1149_v55 = vrot.slane %v1141_v48, %v4907_v20  ;;  %v1156_v56 = vrot.slane %v1142_v50, %v4907_v20  ;;  %v1110_v57 = vpop.permute.xlu0 %1109 }
 0x32b   : > { %v1094_v60 = vpop.permute.xlu1 %1093  ;;  %v1209_v2 = vcombine.low %v1098_v41, %v1110_v57  ;;  %v1210_v4 = vcombine.high %v1098_v41, %v1110_v57 }
 0x32c   : > { %v1157_v61 = vcombine.low %v1133_v53, %v1149_v55  ;;  %v1158_v62 = vcombine.high %v1133_v53, %v1149_v55  ;;  %v1173_v7 = vcombine.low %v1140_v54, %v1156_v56  ;;  %v1174_v8 = vcombine.high %v1140_v54, %v1156_v56 }
 0x32d   : > { %v1217_v36 = vrot.slane %v1209_v2, %v4907_v20  ;;  %v1224_v37 = vrot.slane %v1210_v4, %v4907_v20 }
 0x32e   : > { %v1165_v38 = vrot.slane %v1157_v61, %v4912_v27  ;;  %v1172_v39 = vrot.slane %v1158_v62, %v4912_v27  ;;  %v1181_v42 = vrot.slane %v1173_v7, %v4912_v27  ;;  %v1188_v41 = vrot.slane %v1174_v8, %v4912_v27  ;;  %v1100_v45 = vpop.permute.xlu0 %1099 }
 0x32f   : > { %v1225_v46 = vcombine.low %v1201_v24, %v1217_v36  ;;  %v1226_v47 = vcombine.high %v1201_v24, %v1217_v36  ;;  %v1241_v48 = vcombine.low %v1208_v28, %v1224_v37  ;;  %v1242_v50 = vcombine.high %v1208_v28, %v1224_v37  ;;  %v1106_v4 = vpop.permute.xlu1 %1105 }
 0x330   : > { %v1329_v51 = vcombine.low %v1165_v38, %v1172_v39  ;;  %v4129_v53 = vcombine.high %v1165_v38, %v1172_v39  ;;  %v1345_v52 = vcombine.low %v1181_v42, %v1188_v41  ;;  %v4130_v54 = vcombine.high %v1181_v42, %v1188_v41 }
 0x331   : > { %v1233_v55 = vrot.slane %v1225_v46, %v4912_v27  ;;  %v1240_v56 = vrot.slane %v1226_v47, %v4912_v27  ;;  %v1249_v57 = vrot.slane %v1241_v48, %v4912_v27  ;;  %v1256_v2 = vrot.slane %v1242_v50, %v4912_v27 }
 0x332   : > { %v5047_v61 = vrot.slane %v1329_v51, %v4907_v20  ;;  %v5050_v62 = vrot.slane %v4129_v53, %v4907_v20  ;;  %v5053_v36 = vrot.slane %v1345_v52, %v4907_v20  ;;  %v5056_v37 = vrot.slane %v4130_v54, %v4907_v20  ;;  %v1112_v42 = vpop.permute.xlu0 %1111 }
 0x333   : > { %v1397_v7 = vcombine.low %v1233_v55, %v1240_v56  ;;  %v4131_v8 = vcombine.high %v1233_v55, %v1240_v56  ;;  %v1413_v24 = vcombine.low %v1249_v57, %v1256_v2  ;;  %v4132_v28 = vcombine.high %v1249_v57, %v1256_v2 }
 0x334   : > { %v1261_v38 = vcombine.low %v1094_v60, %v1106_v4  ;;  %v1262_v39 = vcombine.high %v1094_v60, %v1106_v4  ;;  %v1277_v50 = vcombine.low %v1100_v45, %v1112_v42  ;;  %v1278_v51 = vcombine.high %v1100_v45, %v1112_v42 }
 0x335   : > { %v1404_v41 = vrot.slane %v1397_v7, %v4907_v20  ;;  %v1412_v46 = vrot.slane %v4131_v8, %v4907_v20  ;;  %v1420_v47 = vrot.slane %v1413_v24, %v4907_v20  ;;  %v1428_v48 = vrot.slane %v4132_v28, %v4907_v20 }
 0x336   : > { %v1361_v53 = vcombine.low %v5047_v61, %v5050_v62  ;;  %v1377_v52 = vcombine.low %v5053_v36, %v5056_v37  ;;  %v1269_v55 = vrot.slane %v1261_v38, %v4907_v20  ;;  %v1276_v56 = vrot.slane %v1262_v39, %v4907_v20 }
 0x337   : > { %v1429_v54 = vcombine.low %v1404_v41, %v1412_v46  ;;  %v1445_v60 = vcombine.low %v1420_v47, %v1428_v48  ;;  %v1285_v57 = vrot.slane %v1277_v50, %v4907_v20  ;;  %v1292_v2 = vrot.slane %v1278_v51, %v4907_v20 }
 0x338   : > { %v1369_v4 = vrot.slane %v1361_v53, %v4912_v27  ;;  %v1385_v45 = vrot.slane %v1377_v52, %v4912_v27 }
 0x339   : > { %v1437_v7 = vrot.slane %v1429_v54, %v4912_v27  ;;  %v1453_v8 = vrot.slane %v1445_v60, %v4912_v27  ;;  %v1293_v24 = vcombine.low %v1269_v55, %v1285_v57  ;;  %v1294_v28 = vcombine.high %v1269_v55, %v1285_v57 }
 0x33a   : > { %v1309_v42 = vcombine.low %v1276_v56, %v1292_v2  ;;  %v1310_v32 = vcombine.high %v1276_v56, %v1292_v2  ;;  %v1393_v40 = vcombine.low %v1369_v4, %v1385_v45 }
 0x33b   : > { %v1461_v38 = vcombine.low %v1437_v7, %v1453_v8  ;;  %v1301_v39 = vrot.slane %v1293_v24, %v4912_v27  ;;  %v1308_v50 = vrot.slane %v1294_v28, %v4912_v27 }
 0x33c   : > { %v1317_v51 = vrot.slane %v1309_v42, %v4912_v27  ;;  %v1324_v53 = vrot.slane %v1310_v32, %v4912_v27 }
 0x33d   : > { %v4436_v54 = vpack.c.bf16 %v1461_v38, %v1393_v40  ;;  %v1465_v60 = vcombine.low %v1301_v39, %v1308_v50  ;;  %v4133_v55 = vcombine.high %v1301_v39, %v1308_v50  ;;  %v1462_v39 = vcombine.high %v1437_v7, %v1453_v8 }
 0x33e   : > { %v1481_v56 = vcombine.low %v1317_v51, %v1324_v53  ;;  %v4134_v57 = vcombine.high %v1317_v51, %v1324_v53  ;;  %v1394_v51 = vcombine.high %v1369_v4, %v1385_v45  ;;  %v1077_v53 = vmul.f32 0.25, %v937_v15 }
 0x33f   : > { %4438 = vmatpush3.bf16.xpose.msk.msra.mxu1 %vm5080_vm4, %v4436_v54  ;;  %v1472_v2 = vrot.slane %v1465_v60, %v4907_v20  ;;  %v1480_v24 = vrot.slane %v4133_v55, %v4907_v20  ;;  %v1430_v54 = vcombine.high %v1404_v41, %v1412_v46  ;;  %v1446_v60 = vcombine.high %v1420_v47, %v1428_v48 }
 0x340   : > { %v1488_v32 = vrot.slane %v1481_v56, %v4907_v20  ;;  %v1496_v28 = vrot.slane %v4134_v57, %v4907_v20  ;;  %4307 = vmatprep.subr.mxu1 %v4714_v0  ;;  %v4440_v55 = vpack.c.bf16 %v1462_v39, %v1394_v51  ;;  %v1362_v56 = vcombine.high %v5047_v61, %v5050_v62 }
 0x341   : > { %v1497_v42 = vcombine.low %v1472_v2, %v1480_v24  ;;  %v1078_v15 = vmul.f32 0.25, %v1005_v17  ;;  %v1444_v41 = vrot.slane %v1430_v54, %v4912_v27  ;;  %v1460_v46 = vrot.slane %v1446_v60, %v4912_v27 }
 0x342   : > { %v1513_v35 = vcombine.low %v1488_v32, %v1496_v28  ;;  %v1376_v61 = vrot.slane %v1362_v56, %v4912_v27  ;;  %v1080_v48 = vmul.f32 0.25, %v938_v16  ;;  %v1498_v4 = vcombine.high %v1472_v2, %v1480_v24 }
 0x343   : > { %v1505_v40 = vrot.slane %v1497_v42, %v4912_v27  ;;  %v1514_v45 = vcombine.high %v1488_v32, %v1496_v28  ;;  %v1082_v16 = vmul.f32 0.25, %v1074_v23  ;;  %v1464_v57 = vcombine.high %v1444_v41, %v1460_v46 }
 0x344   : > { %v1521_v38 = vrot.slane %v1513_v35, %v4912_v27  ;;  %v1378_v35 = vcombine.high %v5053_v36, %v5056_v37  ;;  %v1079_v36 = vmul.f32 0.25, %v1073_v22  ;;  %v1463_v37 = vcombine.low %v1444_v41, %v1460_v46 }
 0x345   : > { %v1081_v22 = vmul.f32 0.25, %v1006_v18  ;;  %v1512_v59 = vrot.slane %v1498_v4, %v4912_v27  ;;  %v1528_v10 = vrot.slane %v1514_v45, %v4912_v27  ;;  %v1086_v23 = vmul.f32 0.25, %v940_v29 }
 0x346   : > { %v1529_v50 = vcombine.low %v1505_v40, %v1521_v38  ;;  %v1392_v62 = vrot.slane %v1378_v35, %v4912_v27  ;;  %v1530_v17 = vcombine.high %v1505_v40, %v1521_v38  ;;  %v5720_v29 = vlaneseq }
 0x347   : > { %v1531_v8 = vcombine.low %v1512_v59, %v1528_v10  ;;  %v1532_v13 = vcombine.high %v1512_v59, %v1528_v10 }
 0x348   : > { %4308 = vmatpush3.xpose.msk.msra.mxu1 %vm1971_vm3, %v1529_v50  ;;  %v1395_v47 = vcombine.low %v1376_v61, %v1392_v62  ;;  %v1396_v11 = vcombine.high %v1376_v61, %v1392_v62  ;;  %v2365_v34 = vand.u32 127, %v5720_v29 }
 0x349   : > { %4439 = vmatprep.subr.bf16.mxu1 %v4712_v58 }
 0x34a   : > { %v4444_v7 = vpack.c.bf16 %v1463_v37, %v1395_v47  ;;  %v4448_v18 = vpack.c.bf16 %v1464_v57, %v1396_v11  ;;  %vm2366_vm5 = vcmp.lt.s32.totalorder %v2365_v34, 17 }
 0x34b   : > { %4310 = vmatmul.mubr.msk.f32.vlgmr.msra.gmra.mrb[0].mxu1 %vm1971_vm3, %v1077_v53 }
 0x34c   : > { %4442 = vmatpush3.bf16.xpose.msk.msra.mxu1 %vm5080_vm4, %v4440_v55  ;;  %4312 = vmatprep.mubr.msk.f32.mxu1 %vm4713_vm2, %v4714_v0 }
 0x34d   : > { %4322 = vmatprep.subr.mxu1 %v4714_v0 }
 0x34f   : > { %4313 = vmatmul.mubr.msk.f32.gmra.mrb[2].mxu1 %vm1971_vm3, %v1078_v15 }
 0x350   : > { %4315 = vmatprep.mubr.msk.f32.mxu1 %vm4713_vm2, %v4714_v0 }
 0x353   : > { %4316 = vmatmul.mubr.msk.f32.gmra.mrb[4].mxu1 %vm1971_vm3, %v1079_v36 }
 0x354   : > { %4323 = vmatpush3.xpose.msk.msra.mxu1 %vm1971_vm3, %v1530_v17  ;;  %4324 = vmatprep.mubr.msk.f32.mxu1 %vm4713_vm2, %v4714_v0 }
 0x355   : > { %4443 = vmatprep.subr.bf16.mxu1 %v4712_v58 }
 0x357   : > { %4325 = vmatmul.mubr.msk.f32.vlgmr.msra.gmra.mrb[6].mxu1 %vm1971_vm3, %v1080_v48 }
 0x358   : > { %4446 = vmatpush3.bf16.xpose.msk.msra.mxu1 %vm5080_vm4, %v4444_v7  ;;  %4327 = vmatprep.mubr.msk.f32.mxu1 %vm4713_vm2, %v4714_v0 }
 0x359   : > { %4337 = vmatprep.subr.mxu1 %v4714_v0 }
 0x35b   : > { %4328 = vmatmul.mubr.msk.f32.gmra.mrb[8].mxu1 %vm1971_vm3, %v1081_v22 }
 0x35c   : > { %4330 = vmatprep.mubr.msk.f32.mxu1 %vm4713_vm2, %v4714_v0 }
 0x35f   : > { %4331 = vmatmul.mubr.msk.f32.gmra.mrb[10].mxu1 %vm1971_vm3, %v1082_v16 }
 0x360   : > { %4338 = vmatpush3.xpose.msk.msra.mxu1 %vm1971_vm3, %v1531_v8  ;;  %4339 = vmatprep.mubr.msk.f32.mxu1 %vm4713_vm2, %v4714_v0 }
 0x361   : > { %4447 = vmatprep.subr.bf16.mxu1 %v4712_v58 }
 0x363   : > { %4340 = vmatmul.mubr.msk.f32.vlgmr.msra.gmra.mrb[12].mxu1 %vm1971_vm3, %v1083_v12 }
 0x364   : > { %4450 = vmatpush3.bf16.xpose.msk.msra.mxu1 %vm5080_vm4, %v4448_v18  ;;  %4342 = vmatprep.mubr.msk.f32.mxu1 %vm4713_vm2, %v4714_v0 }
 0x365   : > { %4352 = vmatprep.subr.mxu1 %v4714_v0 }
 0x367   : > { %4343 = vmatmul.mubr.msk.f32.gmra.mrb[14].mxu1 %vm1971_vm3, %v1084_v1 }
 0x368   : > { %4345 = vmatprep.mubr.msk.f32.mxu1 %vm4713_vm2, %v4714_v0 }
 0x36b   : > { %4346 = vmatmul.mubr.msk.f32.gmra.mrb[16].mxu1 %vm1971_vm3, %v1085_v6 }
 0x36c   : > { %4353 = vmatpush3.xpose.msk.msra.mxu1 %vm1971_vm3, %v1532_v13  ;;  %4354 = vmatprep.mubr.msk.f32.mxu1 %vm4713_vm2, %v4714_v0 }
 0x36d   : > { %4454 = vmatprep.subr.bf16.mxu1 %v4712_v58 }
 0x36f   : > { %4355 = vmatmul.mubr.msk.f32.vlgmr.msra.gmra.mrb[18].mxu1 %vm1971_vm3, %v1086_v23  ;;  %v539_v23 = vrot.slane %v4879_v63, %v4872_v49 }
 0x370   : > { %4357 = vmatprep.mubr.msk.f32.mxu1 %vm4713_vm2, %v4714_v0 }
 0x371   : > { %v5256_v19 = vadd.f32 %v4883_v3, %v539_v23  ;;  %v5270_v63 = vadd.f32 %v4893_v9, %v539_v23 }
 0x373   : > { %4358 = vmatmul.mubr.msk.f32.gmra.mrb[20].mxu1 %vm1971_vm3, %v1087_v30 }
 0x374   : > { %4360 = vmatprep.mubr.msk.f32.mxu1 %vm4713_vm2, %v4714_v0 }
 0x377   : > { %4361 = vmatmul.mubr.msk.f32.gmra.mrb[22].mxu1 %vm1971_vm3, %v1088_v21  ;;  %v5263_v21 = vadd.f32 %v4885_v5, %v539_v23 }
 0x378   : > { %4384 = vmatprep.mubr.msk.f32.mxu1 %vm4713_vm2, %v4714_v0 }
 0x41e   : > { %v2056_v14 = vpop.f32.mrb[0].mxu1 }
 0x41f   : > { %v5194_v25 = vsel %vm2366_vm5, %v2056_v14, -1e+30  ;;  %v4311_v31 = vpop.f32.mrb[1].mxu1 }
 0x420   : > { %v2382_v52 = vsel %vm2381_vm6, %v5194_v25, -inf }
 0x421   : > { %2383 = vmax.xlane.f32.xlu1 %v2382_v52 }
 0x422   : > { %v2061_v26 = vpop.f32.mrb[2].mxu1 }
 0x423   : > { %v5199_v33 = vsel %vm2366_vm5, %v2061_v26, -1e+30  ;;  %v4314_v2 = vpop.f32.mrb[3].mxu1 }
 0x424   : > { %v2385_v24 = vsel %vm2381_vm6, %v5199_v33, -inf }
 0x425   : > { %2386 = vmax.xlane.f32.xlu0 %v2385_v24 }
 0x426   : > { %v2066_v32 = vpop.f32.mrb[4].mxu1 }
 0x427   : > { %v5204_v28 = vsel %vm2366_vm5, %v2066_v32, -1e+30  ;;  %v4317_v42 = vpop.f32.mrb[5].mxu1 }
 0x428   : > { %v2388_v40 = vsel %vm2381_vm6, %v5204_v28, -inf }
 0x429   : > { %2389 = vmax.xlane.f32.xlu1 %v2388_v40 }
 0x42a   : > { %v2154_v38 = vpop.f32.mrb[6].mxu1 }
 0x42b   : > { %v5209_v39 = vsel %vm2366_vm5, %v2154_v38, -1e+30  ;;  %v4326_v50 = vpop.f32.mrb[7].mxu1 }
 0x42c   : > { %v2391_v51 = vsel %vm2381_vm6, %v5209_v39, -inf }
 0x42d   : > { %2392 = vmax.xlane.f32.xlu0 %v2391_v51 }
 0x42e   : > { %v2159_v53 = vpop.f32.mrb[8].mxu1 }
 0x42f   : > { %v5214_v54 = vsel %vm2366_vm5, %v2159_v53, -1e+30  ;;  %v4329_v60 = vpop.f32.mrb[9].mxu1 }
 0x430   : > { %v2394_v55 = vsel %vm2381_vm6, %v5214_v54, -inf }
 0x431   : > { %2395 = vmax.xlane.f32.xlu0 %v2394_v55 }
 0x432   : > { %v2164_v56 = vpop.f32.mrb[10].mxu1 }
 0x433   : > { %v5219_v35 = vsel %vm2366_vm5, %v2164_v56, -1e+30  ;;  %v4332_v15 = vpop.f32.mrb[11].mxu1 }
 0x434   : > { %v2397_v41 = vsel %vm2381_vm6, %v5219_v35, -inf }
 0x435   : > { %2398 = vmax.xlane.f32.xlu0 %v2397_v41 }
 0x436   : > { %v2252_v46 = vpop.f32.mrb[12].mxu1 }
 0x437   : > { %v5224_v61 = vsel %vm2366_vm5, %v2252_v46, -1e+30  ;;  %v4341_v62 = vpop.f32.mrb[13].mxu1 }
 0x438   : > { %v2400_v36 = vsel %vm2381_vm6, %v5224_v61, -inf }
 0x439   : > { %2401 = vmax.xlane.f32.xlu1 %v2400_v36 }
 0x43a   : > { %v2257_v17 = vpop.f32.mrb[14].mxu1 }
 0x43b   : > { %v5229_v37 = vsel %vm2366_vm5, %v2257_v17, -1e+30  ;;  %v4344_v47 = vpop.f32.mrb[15].mxu1 }
 0x43c   : > { %v2403_v48 = vsel %vm2381_vm6, %v5229_v37, -inf }
 0x43d   : > { %2404 = vmax.xlane.f32.xlu1 %v2403_v48 }
 0x43e   : > { %v2262_v4 = vpop.f32.mrb[16].mxu1 }
 0x43f   : > { %v5234_v45 = vsel %vm2366_vm5, %v2262_v4, -1e+30  ;;  %v4347_v7 = vpop.f32.mrb[17].mxu1 }
 0x440   : > { %v2406_v22 = vsel %vm2381_vm6, %v5234_v45, -inf }
 0x441   : > { %2407 = vmax.xlane.f32.xlu1 %v2406_v22 }
 0x442   : > { %v2350_v59 = vpop.f32.mrb[18].mxu1 }
 0x443   : > { %v5239_v10 = vsel %vm2366_vm5, %v2350_v59, -1e+30  ;;  %v4356_v16 = vpop.f32.mrb[19].mxu1 }
 0x444   : > { %v2409_v8 = vsel %vm2381_vm6, %v5239_v10, -inf }
 0x445   : > { %2410 = vmax.xlane.f32.xlu0 %v2409_v8 }
 0x446   : > { %v2355_v57 = vpop.f32.mrb[20].mxu1 }
 0x447   : > { %v5244_v11 = vsel %vm2366_vm5, %v2355_v57, -1e+30  ;;  %v4359_v12 = vpop.f32.mrb[21].mxu1 }
 0x448   : > { %v2412_v18 = vsel %vm2381_vm6, %v5244_v11, -inf }
 0x449   : > { %2413 = vmax.xlane.f32.xlu0 %v2412_v18 }
 0x44a   : > { %v2360_v1 = vpop.f32.mrb[22].mxu1 }
 0x44b   : > { %v5249_v6 = vsel %vm2366_vm5, %v2360_v1, -1e+30  ;;  %v4362_v13 = vpop.f32.mrb[23].mxu1 }
 0x44c   : > { %v2415_v30 = vsel %vm2381_vm6, %v5249_v6, -inf }
 0x44d   : > { %2416 = vmax.xlane.f32.xlu0 %v2415_v30 }
 0x452   : > { %1536 = vrot.lane.b32.xlu1 %v5256_v19, %s4707_s27 }
 0x456   : > { %1545 = vrot.lane.b32.xlu1 %v5256_v19, %s4706_s2 }
 0x45a   : > { %1547 = vrot.lane.b32.xlu1 %v5263_v21, %s4706_s2 }
 0x45e   : > { %1554 = vrot.lane.b32.xlu1 %v5256_v19, %s4708_s10 }
 0x462   : > { %1549 = vrot.lane.b32.xlu1 %v5270_v63, %s4706_s2 }
 0x463   : > { %1538 = vrot.lane.b32.xlu0 %v5263_v21, %s4707_s27 }
 0x466   : > { %1558 = vrot.lane.b32.xlu1 %v5270_v63, %s4708_s10 }
 0x467   : > { %1556 = vrot.lane.b32.xlu0 %v5263_v21, %s4708_s10 }
 0x46b   : > { %1540 = vrot.lane.b32.xlu0 %v5270_v63, %s4707_s27 }
 0x4ae   : > { %v2384_v3 = vpop.xlane.xlu1 %2383 }
 0x4af   : > { %v2418_v5 = vsub.f32 %v5194_v25, %v2384_v3 }
 0x4b1   : > { %v2430_v9 = vmul.f32 1.442695, %v2418_v5 }
 0x4b2   : > { %v2387_v29 = vpop.xlane.xlu0 %2386 }
 0x4b3   : > { %4583 = vpow2.f32 %v2430_v9  ;;  %v2419_v34 = vsub.f32 %v5199_v33, %v2387_v29 }
 0x4b5   : > { %v2432_v14 = vmul.f32 1.442695, %v2419_v34 }
 0x4b6   : > { %v2390_v31 = vpop.xlane.xlu1 %2389 }
 0x4b7   : > { %4585 = vpow2.f32 %v2432_v14  ;;  %v2420_v52 = vsub.f32 %v5204_v28, %v2390_v31 }
 0x4b9   : > { %v2434_v26 = vmul.f32 1.442695, %v2420_v52 }
 0x4ba   : > { %v2393_v2 = vpop.xlane.xlu0 %2392 }
 0x4bb   : > { %4587 = vpow2.f32 %v2434_v26  ;;  %v2421_v24 = vsub.f32 %v5209_v39, %v2393_v2 }
 0x4bd   : > { %v5286_v32 = vpop.eup %4583  ;;  %v2436_v42 = vmul.f32 1.442695, %v2421_v24 }
 0x4be   : > { %v2396_v40 = vpop.xlane.xlu0 %2395  ;;  %v2454_v25 = vsel %vm2381_vm6, %v5286_v32, 0.0 }
 0x4bf   : > { %4589 = vpow2.f32 %v2436_v42  ;;  %v2422_v33 = vsub.f32 %v5214_v54, %v2396_v40  ;;  %2455 = vadd.xlane.f32.xlu1 %v2454_v25 }
 0x4c1   : > { %v5291_v38 = vpop.eup %4585  ;;  %v2438_v50 = vmul.f32 1.442695, %v2422_v33 }
 0x4c2   : > { %v2399_v28 = vpop.xlane.xlu0 %2398  ;;  %v2457_v51 = vsel %vm2381_vm6, %v5291_v38, 0.0 }
 0x4c3   : > { %4591 = vpow2.f32 %v2438_v50  ;;  %v2423_v39 = vsub.f32 %v5219_v35, %v2399_v28  ;;  %2458 = vadd.xlane.f32.xlu1 %v2457_v51 }
 0x4c5   : > { %v5296_v53 = vpop.eup %4587  ;;  %v2440_v60 = vmul.f32 1.442695, %v2423_v39 }
 0x4c6   : > { %v2402_v55 = vpop.xlane.xlu1 %2401  ;;  %v2460_v56 = vsel %vm2381_vm6, %v5296_v53, 0.0 }
 0x4c7   : > { %4593 = vpow2.f32 %v2440_v60  ;;  %v2424_v54 = vsub.f32 %v5224_v61, %v2402_v55  ;;  %2461 = vadd.xlane.f32.xlu0 %v2460_v56 }
 0x4c9   : > { %v5301_v15 = vpop.eup %4589  ;;  %v2442_v41 = vmul.f32 1.442695, %v2424_v54 }
 0x4ca   : > { %v2405_v46 = vpop.xlane.xlu1 %2404  ;;  %v2463_v62 = vsel %vm2381_vm6, %v5301_v15, 0.0 }
 0x4cb   : > { %4595 = vpow2.f32 %v2442_v41  ;;  %2464 = vadd.xlane.f32.xlu0 %v2463_v62  ;;  %v2425_v35 = vsub.f32 %v5229_v37, %v2405_v46 }
 0x4cd   : > { %v5306_v36 = vpop.eup %4591  ;;  %v2444_v48 = vmul.f32 1.442695, %v2425_v35 }
 0x4ce   : > { %v2408_v17 = vpop.xlane.xlu1 %2407  ;;  %v2466_v47 = vsel %vm2381_vm6, %v5306_v36, 0.0 }
 0x4cf   : > { %v2426_v61 = vsub.f32 %v5234_v45, %v2408_v17  ;;  %2467 = vadd.xlane.f32.xlu0 %v2466_v47  ;;  %4597 = vpow2.f32 %v2444_v48 }
 0x4d1   : > { %v5311_v4 = vpop.eup %4593  ;;  %v2446_v7 = vmul.f32 1.442695, %v2426_v61 }
 0x4d2   : > { %v1537_v22 = vpop.permute.xlu1 %1536  ;;  %v2411_v59 = vpop.xlane.xlu0 %2410  ;;  %v2469_v16 = vsel %vm2381_vm6, %v5311_v4, 0.0 }
 0x4d3   : > { %v2427_v37 = vsub.f32 %v5239_v10, %v2411_v59  ;;  %2470 = vadd.xlane.f32.xlu1 %v2469_v16  ;;  %4599 = vpow2.f32 %v2446_v7 }
 0x4d5   : > { %v5316_v8 = vpop.eup %4595  ;;  %v2448_v57 = vmul.f32 1.442695, %v2427_v37 }
 0x4d6   : > { %v1546_v12 = vpop.permute.xlu1 %1545  ;;  %v2414_v45 = vpop.xlane.xlu0 %2413  ;;  %v2472_v18 = vsel %vm2381_vm6, %v5316_v8, 0.0 }
 0x4d7   : > { %4601 = vpow2.f32 %v2448_v57  ;;  %v2428_v1 = vsub.f32 %v5244_v11, %v2414_v45  ;;  %2473 = vadd.xlane.f32.xlu0 %v2472_v18  ;;  %v1563_v3 = vcombine.low %v5256_v19, %v1546_v12  ;;  %v1564_v5 = vcombine.high %v5256_v19, %v1546_v12 }
 0x4d9   : > { %v2450_v13 = vmul.f32 1.442695, %v2428_v1  ;;  %v5324_v29 = vpop.eup %4597  ;;  %v1578_v19 = vrot.slane %v1564_v5, %v4907_v20 }
 0x4da   : > { %v1548_v23 = vpop.permute.xlu1 %1547  ;;  %v2417_v30 = vpop.xlane.xlu0 %2416 }
 0x4db   : > { %v2429_v10 = vsub.f32 %v5249_v6, %v2417_v30  ;;  %4603 = vpow2.f32 %v2450_v13  ;;  %v1631_v34 = vcombine.low %v5263_v21, %v1548_v23  ;;  %v1632_v14 = vcombine.high %v5263_v21, %v1548_v23 }
 0x4dc   : > { %v1571_v6 = vrot.slane %v1563_v3, %v4907_v20  ;;  %v2475_v21 = vsel %vm2381_vm6, %v5324_v29, 0.0 }
 0x4dd   : > { %v2452_v9 = vmul.f32 1.442695, %v2429_v10  ;;  %v5328_v52 = vpop.eup %4599  ;;  %v1639_v25 = vrot.slane %v1631_v34, %v4907_v20  ;;  %v1646_v33 = vrot.slane %v1632_v14, %v4907_v20 }
 0x4de   : > { %v1555_v31 = vpop.permute.xlu1 %1554  ;;  %v1539_v11 = vpop.permute.xlu0 %1538  ;;  %v2478_v39 = vsel %vm2381_vm6, %v5328_v52, 0.0 }
 0x4df   : > { %4605 = vpow2.f32 %v2452_v9  ;;  %v1579_v26 = vcombine.low %v1537_v22, %v1555_v31  ;;  %v1580_v2 = vcombine.high %v1537_v22, %v1555_v31 }
 0x4e1   : > { %v5331_v24 = vpop.eup %4601  ;;  %v1587_v42 = vrot.slane %v1579_v26, %v4907_v20  ;;  %v1594_v40 = vrot.slane %v1580_v2, %v4907_v20 }
 0x4e2   : > { %v1550_v50 = vpop.permute.xlu1 %1549  ;;  %v1557_v28 = vpop.permute.xlu0 %1556  ;;  %v2481_v51 = vsel %vm2381_vm6, %v5331_v24, 0.0 }
 0x4e3   : > { %v1595_v60 = vcombine.low %v1571_v6, %v1587_v42  ;;  %v1596_v55 = vcombine.high %v1571_v6, %v1587_v42  ;;  %v1611_v56 = vcombine.low %v1578_v19, %v1594_v40  ;;  %v1612_v54 = vcombine.high %v1578_v19, %v1594_v40  ;;  %2482 = vadd.xlane.f32.xlu0 %v2481_v51 }
 0x4e4   : > { %v1699_v41 = vcombine.low %v5270_v63, %v1550_v50  ;;  %v1700_v46 = vcombine.high %v5270_v63, %v1550_v50  ;;  %v1647_v62 = vcombine.low %v1539_v11, %v1557_v28  ;;  %v1648_v35 = vcombine.high %v1539_v11, %v1557_v28 }
 0x4e5   : > { %v1603_v17 = vrot.slane %v1595_v60, %v4912_v27  ;;  %v1610_v47 = vrot.slane %v1596_v55, %v4912_v27  ;;  %v1619_v61 = vrot.slane %v1611_v56, %v4912_v27  ;;  %v1626_v48 = vrot.slane %v1612_v54, %v4912_v27  ;;  %v5354_v45 = vpop.eup %4603 }
 0x4e6   : > { %v1707_v7 = vrot.slane %v1699_v41, %v4907_v20  ;;  %v1714_v22 = vrot.slane %v1700_v46, %v4907_v20  ;;  %v1655_v59 = vrot.slane %v1647_v62, %v4907_v20  ;;  %v1662_v16 = vrot.slane %v1648_v35, %v4907_v20  ;;  %v1559_v30 = vpop.permute.xlu1 %1558  ;;  %v1541_v10 = vpop.permute.xlu0 %1540 }
 0x4e7   : > { %v1767_v37 = vcombine.low %v1603_v17, %v1610_v47  ;;  %v4135_v63 = vcombine.high %v1603_v17, %v1610_v47  ;;  %v1783_v57 = vcombine.low %v1619_v61, %v1626_v48  ;;  %v4136_v12 = vcombine.high %v1619_v61, %v1626_v48  ;;  %2476 = vadd.xlane.f32.xlu0 %v2475_v21 }
 0x4e8   : > { %v1663_v18 = vcombine.low %v1639_v25, %v1655_v59  ;;  %v1664_v1 = vcombine.high %v1639_v25, %v1655_v59  ;;  %v1679_v13 = vcombine.low %v1646_v33, %v1662_v16  ;;  %v1680_v23 = vcombine.high %v1646_v33, %v1662_v16 }
 0x4e9   : > { %v5356_v3 = vpop.eup %4605  ;;  %v1774_v5 = vrot.slane %v1767_v37, %v4907_v20  ;;  %v1782_v9 = vrot.slane %v4135_v63, %v4907_v20  ;;  %v1790_v34 = vrot.slane %v1783_v57, %v4907_v20  ;;  %v1798_v14 = vrot.slane %v4136_v12, %v4907_v20 }
 0x4ea   : > { %v1671_v31 = vrot.slane %v1663_v18, %v4912_v27  ;;  %v1678_v11 = vrot.slane %v1664_v1, %v4912_v27  ;;  %v1687_v26 = vrot.slane %v1679_v13, %v4912_v27  ;;  %v1694_v2 = vrot.slane %v1680_v23, %v4912_v27 }
 0x4eb   : > { %v1715_v6 = vcombine.low %v1541_v10, %v1559_v30  ;;  %v1716_v19 = vcombine.high %v1541_v10, %v1559_v30  ;;  %v2484_v42 = vsel %vm2381_vm6, %v5354_v45, 0.0  ;;  %2479 = vadd.xlane.f32.xlu0 %v2478_v39  ;;  %v2487_v40 = vsel %vm2381_vm6, %v5356_v3, 0.0 }
 0x4ec   : > { %v1835_v21 = vcombine.low %v1671_v31, %v1678_v11  ;;  %v4137_v25 = vcombine.high %v1671_v31, %v1678_v11  ;;  %v1851_v33 = vcombine.low %v1687_v26, %v1694_v2  ;;  %v4138_v50 = vcombine.high %v1687_v26, %v1694_v2  ;;  %2485 = vadd.xlane.f32.xlu1 %v2484_v42 }
 0x4ed   : > { %v1723_v28 = vrot.slane %v1715_v6, %v4907_v20  ;;  %v1730_v51 = vrot.slane %v1716_v19, %v4907_v20  ;;  %v1799_v60 = vcombine.low %v1774_v5, %v1782_v9  ;;  %v1815_v55 = vcombine.low %v1790_v34, %v1798_v14 }
 0x4ee   : > { %v1842_v56 = vrot.slane %v1835_v21, %v4907_v20  ;;  %v1850_v54 = vrot.slane %v4137_v25, %v4907_v20  ;;  %v1858_v39 = vrot.slane %v1851_v33, %v4907_v20  ;;  %v1866_v41 = vrot.slane %v4138_v50, %v4907_v20 }
 0x4ef   : > { %v1731_v46 = vcombine.low %v1707_v7, %v1723_v28  ;;  %v1732_v62 = vcombine.high %v1707_v7, %v1723_v28  ;;  %v1747_v35 = vcombine.low %v1714_v22, %v1730_v51  ;;  %v1748_v17 = vcombine.high %v1714_v22, %v1730_v51 }
 0x4f0   : > { %2488 = vadd.xlane.f32.xlu1 %v2487_v40  ;;  %v1807_v47 = vrot.slane %v1799_v60, %v4912_v27  ;;  %v1823_v61 = vrot.slane %v1815_v55, %v4912_v27  ;;  %v1867_v48 = vcombine.low %v1842_v56, %v1850_v54  ;;  %v1883_v59 = vcombine.low %v1858_v39, %v1866_v41 }
 0x4f1   : > { %v1739_v16 = vrot.slane %v1731_v46, %v4912_v27  ;;  %v1746_v37 = vrot.slane %v1732_v62, %v4912_v27  ;;  %v1755_v63 = vrot.slane %v1747_v35, %v4912_v27  ;;  %v1762_v57 = vrot.slane %v1748_v17, %v4912_v27 }
 0x4f2   : > { %v1831_v12 = vcombine.low %v1807_v47, %v1823_v61  ;;  %v1875_v7 = vrot.slane %v1867_v48, %v4912_v27  ;;  %v1891_v22 = vrot.slane %v1883_v59, %v4912_v27  ;;  %v1832_v18 = vcombine.high %v1807_v47, %v1823_v61 }
 0x4f3   : > { %v1903_v1 = vcombine.low %v1739_v16, %v1746_v37  ;;  %v4139_v13 = vcombine.high %v1739_v16, %v1746_v37  ;;  %v1919_v23 = vcombine.low %v1755_v63, %v1762_v57  ;;  %v4140_v30 = vcombine.high %v1755_v63, %v1762_v57 }
 0x4f4   : > { %v1899_v10 = vcombine.low %v1875_v7, %v1891_v22  ;;  %v1900_v31 = vcombine.high %v1875_v7, %v1891_v22  ;;  %v1800_v11 = vcombine.high %v1774_v5, %v1782_v9  ;;  %v1816_v26 = vcombine.high %v1790_v34, %v1798_v14 }
 0x4f5   : > { %v1910_v2 = vrot.slane %v1903_v1, %v4907_v20  ;;  %v1918_v6 = vrot.slane %v4139_v13, %v4907_v20  ;;  %v1926_v19 = vrot.slane %v1919_v23, %v4907_v20  ;;  %v1934_v42 = vrot.slane %v4140_v30, %v4907_v20 }
 0x4f6   : > { %v4452_v40 = vpack.c.bf16 %v1899_v10, %v1831_v12  ;;  %v4455_v21 = vpack.c.bf16 %v1900_v31, %v1832_v18  ;;  %v1814_v25 = vrot.slane %v1800_v11, %v4912_v27  ;;  %v1830_v33 = vrot.slane %v1816_v26, %v4912_v27 }
 0x4f7   : > { %v1935_v50 = vcombine.low %v1910_v2, %v1918_v6  ;;  %v1951_v28 = vcombine.low %v1926_v19, %v1934_v42  ;;  %v1868_v51 = vcombine.high %v1842_v56, %v1850_v54  ;;  %v1884_v60 = vcombine.high %v1858_v39, %v1866_v41 }
 0x4f8   : > { %4453 = vmatpush3.bf16.msra.mxu0 %v4452_v40  ;;  %4456 = vmatpush3.bf16.msra.mxu1 %v4455_v21  ;;  %v1833_v5 = vcombine.low %v1814_v25, %v1830_v33  ;;  %v1936_v9 = vcombine.high %v1910_v2, %v1918_v6  ;;  %v1952_v34 = vcombine.high %v1926_v19, %v1934_v42 }
 0x4f9   : > { %4367 = vmatprep.subr.mxu0 %v4714_v0  ;;  %4382 = vmatprep.subr.mxu1 %v4714_v0  ;;  %v1943_v14 = vrot.slane %v1935_v50, %v4912_v27  ;;  %v1959_v55 = vrot.slane %v1951_v28, %v4912_v27  ;;  %v1882_v46 = vrot.slane %v1868_v51, %v4912_v27 }
 0x4fa   : > { %v1898_v62 = vrot.slane %v1884_v60, %v4912_v27  ;;  %v1950_v56 = vrot.slane %v1936_v9, %v4912_v27  ;;  %v1966_v54 = vrot.slane %v1952_v34, %v4912_v27  ;;  %v1834_v39 = vcombine.high %v1814_v25, %v1830_v33 }
 0x4fb   : > { %v1967_v41 = vcombine.low %v1943_v14, %v1959_v55  ;;  %v1968_v35 = vcombine.high %v1943_v14, %v1959_v55  ;;  %v5721_v60 = vmov 0  }
 0x4fc   : > { %v1901_v17 = vcombine.low %v1882_v46, %v1898_v62  ;;  %v1969_v47 = vcombine.low %v1950_v56, %v1966_v54  ;;  %v1902_v61 = vcombine.high %v1882_v46, %v1898_v62  ;;  %v1970_v48 = vcombine.high %v1950_v56, %v1966_v54 }
 0x4fd   : > { %4368 = vmatpush3.msra.mxu0 %v1967_v41  ;;  %4383 = vmatpush3.msra.mxu1 %v1968_v35 }
 0x4fe   : > { %4457 = vmatprep.subr.bf16.mxu0 %v4712_v58  ;;  %v4458_v59 = vpack.c.bf16 %v1901_v17, %v1833_v5  ;;  %4460 = vmatprep.subr.bf16.mxu1 %v4712_v58  ;;  %v4461_v16 = vpack.c.bf16 %v1902_v61, %v1834_v39  ;;  %v4545_v5 = vld [vmem:[%s4809_s24] sm:$0xff]  }
 0x54c   : > { %v2456_v37 = vpop.xlane.xlu1 %2455 }
 0x54d   : > { %4607 = vrcp.f32 %v2456_v37 }
 0x550   : > { %v2459_v63 = vpop.xlane.xlu1 %2458 }
 0x551   : > { %4609 = vrcp.f32 %v2459_v63 }
 0x554   : > { %v2462_v57 = vpop.xlane.xlu0 %2461 }
 0x555   : > { %4611 = vrcp.f32 %v2462_v57 }
 0x557   : > { %v4608_v12 = vpop.eup %4607 }
 0x558   : > { %v2502_v7 = vmul.f32 %v4608_v12, %v5286_v32  ;;  %v2465_v22 = vpop.xlane.xlu0 %2464 }
 0x559   : > { %4613 = vrcp.f32 %v2465_v22 }
 0x55a   : > { %4370 = vmatmul.mubr.msk.f32.vlgmr.msra.gmra.mrb[8].mxu0 %vm2381_vm6, %v2502_v7 }
 0x55b   : > { %v4610_v18 = vpop.eup %4609  ;;  %4459 = vmatpush3.bf16.msra.mxu0 %v4458_v59  ;;  %4372 = vmatprep.mubr.msk.f32.mxu0 %vm4713_vm2, %v4714_v0 }
 0x55c   : > { %v2468_v58 = vpop.xlane.xlu0 %2467  ;;  %4397 = vmatprep.subr.mxu0 %v4714_v0  ;;  %v2503_v1 = vmul.f32 %v4610_v18, %v5291_v38 }
 0x55d   : > { %4615 = vrcp.f32 %v2468_v58 }
 0x55e   : > { %4373 = vmatmul.mubr.msk.f32.gmra.mrb[10].mxu0 %vm2381_vm6, %v2503_v1 }
 0x55f   : > { %v4612_v13 = vpop.eup %4611  ;;  %4398 = vmatpush3.msra.mxu0 %v1969_v47  ;;  %4375 = vmatprep.mubr.msk.f32.mxu0 %vm4713_vm2, %v4714_v0 }
 0x560   : > { %v2471_v32 = vpop.xlane.xlu1 %2470  ;;  %v2504_v23 = vmul.f32 %v4612_v13, %v5296_v53  ;;  %4423 = vmatprep.subr.bf16.mxu0 %v4545_v5 }
 0x561   : > { %4617 = vrcp.f32 %v2471_v32 }
 0x562   : > { %4376 = vmatmul.mubr.msk.f32.gmra.mrb[12].mxu0 %vm2381_vm6, %v2504_v23 }
 0x563   : > { %v4614_v30 = vpop.eup %4613  ;;  %4399 = vmatprep.mubr.msk.f32.mxu0 %vm4713_vm2, %v4714_v0 }
 0x564   : > { %v2505_v38 = vmul.f32 %v4614_v30, %v5301_v15  ;;  %v2474_v10 = vpop.xlane.xlu0 %2473 }
 0x565   : > { %4619 = vrcp.f32 %v2474_v10 }
 0x566   : > { %4385 = vmatmul.mubr.msk.f32.vlgmr.msra.gmra.mrb[24].mxu1 %vm2381_vm6, %v2505_v38 }
 0x567   : > { %v4616_v31 = vpop.eup %4615  ;;  %4462 = vmatpush3.bf16.msra.mxu1 %v4461_v16  ;;  %4387 = vmatprep.mubr.msk.f32.mxu1 %vm4713_vm2, %v4714_v0 }
 0x568   : > { %4412 = vmatprep.subr.mxu1 %v4714_v0  ;;  %v2506_v53 = vmul.f32 %v4616_v31, %v5306_v36 }
 0x56a   : > { %4388 = vmatmul.mubr.msk.f32.gmra.mrb[26].mxu1 %vm2381_vm6, %v2506_v53 }
 0x56b   : > { %v4618_v11 = vpop.eup %4617  ;;  %4413 = vmatpush3.msra.mxu1 %v1970_v48  ;;  %4390 = vmatprep.mubr.msk.f32.mxu1 %vm4713_vm2, %v4714_v0 }
 0x56c   : > { %v2507_v15 = vmul.f32 %v4618_v11, %v5311_v4 }
 0x56e   : > { %4391 = vmatmul.mubr.msk.f32.gmra.mrb[28].mxu1 %vm2381_vm6, %v2507_v15 }
 0x56f   : > { %v4620_v26 = vpop.eup %4619  ;;  %4414 = vmatprep.mubr.msk.f32.mxu1 %vm4713_vm2, %v4714_v0 }
 0x570   : > { %v2508_v2 = vmul.f32 %v4620_v26, %v5316_v8  ;;  %v2483_v6 = vpop.xlane.xlu0 %2482 }
 0x571   : > { %4621 = vrcp.f32 %v2483_v6 }
 0x572   : > { %4400 = vmatmul.mubr.msk.f32.vlgmr.msra.gmra.mrb[14].mxu0 %vm2381_vm6, %v2508_v2 }
 0x573   : > { %4402 = vmatprep.mubr.msk.f32.mxu0 %vm4713_vm2, %v4714_v0  ;;  %4424 = vmatpush3.bf16.msra.mxu0 %v4545_v5 }
 0x574   : > { %v2477_v36 = vpop.xlane.xlu0 %2476 }
 0x575   : > { %4623 = vrcp.f32 %v2477_v36 }
 0x578   : > { %v2480_v19 = vpop.xlane.xlu0 %2479 }
 0x579   : > { %v2486_v42 = vpop.xlane.xlu1 %2485  ;;  %4625 = vrcp.f32 %v2480_v19 }
 0x57a   : > { %4627 = vrcp.f32 %v2486_v42 }
 0x57b   : > { %v4622_v4 = vpop.eup %4621 }
 0x57c   : > { %v2511_v40 = vmul.f32 %v4622_v4, %v5331_v24 }
 0x57d   : > { %v2489_v21 = vpop.xlane.xlu1 %2488 }
 0x57e   : > { %4629 = vrcp.f32 %v2489_v21  ;;  %4415 = vmatmul.mubr.msk.f32.vlgmr.msra.gmra.mrb[30].mxu1 %vm2381_vm6, %v2511_v40 }
 0x57f   : > { %v4624_v8 = vpop.eup %4623  ;;  %4417 = vmatprep.mubr.msk.f32.mxu1 %vm4713_vm2, %v4714_v0 }
 0x580   : > { %v2509_v25 = vmul.f32 %v4624_v8, %v5324_v29 }
 0x582   : > { %4403 = vmatmul.mubr.msk.f32.gmra.mrb[16].mxu0 %vm2381_vm6, %v2509_v25 }
 0x583   : > { %v4626_v33 = vpop.eup %4625  ;;  %4405 = vmatprep.mubr.msk.f32.mxu0 %vm4713_vm2, %v4714_v0 }
 0x584   : > { %v4628_v50 = vpop.eup %4627  ;;  %v2510_v24 = vmul.f32 %v4626_v33, %v5328_v52 }
 0x585   : > { %v2512_v28 = vmul.f32 %v4628_v50, %v5354_v45 }
 0x586   : > { %4406 = vmatmul.mubr.msk.f32.gmra.mrb[18].mxu0 %vm2381_vm6, %v2510_v24 }
 0x587   : > { %4418 = vmatmul.mubr.msk.f32.gmra.mrb[32].mxu1 %vm2381_vm6, %v2512_v28 }
 0x588   : > { %v4630_v51 = vpop.eup %4629  ;;  %4420 = vmatprep.mubr.msk.f32.mxu1 %vm4713_vm2, %v4714_v0 }
 0x589   : > { %v2513_v29 = vmul.f32 %v4630_v51, %v5356_v3 }
 0x58b   : > { %4421 = vmatmul.mubr.msk.f32.gmra.mrb[34].mxu1 %vm2381_vm6, %v2513_v29 }
 0x58c   : > { %3605 = vmatprep.mubr.bf16.mxu1 %v5721_v60 }
 0x62d   : > { %v2589_v52 = vpop.f32.mrb[8].mxu0 }
 0x62e   : > { %v4371_v9 = vpop.f32.mrb[9].mxu0 }
 0x631   : > { %v2594_v45 = vpop.f32.mrb[10].mxu0 }
 0x632   : > { %v4374_v34 = vpop.f32.mrb[11].mxu0 }
 0x635   : > { %v2599_v14 = vpop.f32.mrb[12].mxu0 }
 0x636   : > { %v4377_v55 = vpop.f32.mrb[13].mxu0 }
 0x639   : > { %v2678_v46 = vpop.f32.mrb[24].mxu1 }
 0x63a   : > { %v4386_v62 = vpop.f32.mrb[25].mxu1 }
 0x63d   : > { %v2683_v56 = vpop.f32.mrb[26].mxu1 }
 0x63e   : > { %v4389_v54 = vpop.f32.mrb[27].mxu1 }
 0x641   : > { %v5448_v0 = vpop.f32.mrb[28].mxu1 }
 0x642   : > { %v4392_v3 = vpop.f32.mrb[29].mxu1 }
 0x645   : > { %v2767_v39 = vpop.f32.mrb[14].mxu0 }
 0x646   : > { %v2870_v41 = vcombine.low %v2589_v52, %v2767_v39  ;;  %v2871_v35 = vcombine.high %v2589_v52, %v2767_v39  ;;  %v4401_v17 = vpop.f32.mrb[15].mxu0 }
 0x648   : > { %v2878_v16 = vrot.slane %v2870_v41, %v4907_v20  ;;  %v2885_v37 = vrot.slane %v2871_v35, %v4907_v20 }
 0x651   : > { %v2856_v47 = vpop.f32.mrb[30].mxu1 }
 0x652   : > { %v2886_v61 = vcombine.low %v2678_v46, %v2856_v47  ;;  %v2887_v48 = vcombine.high %v2678_v46, %v2856_v47  ;;  %v4416_v59 = vpop.f32.mrb[31].mxu1 }
 0x654   : > { %v2894_v63 = vrot.slane %v2886_v61, %v4907_v20  ;;  %v2901_v57 = vrot.slane %v2887_v48, %v4907_v20 }
 0x655   : > { %v2772_v12 = vpop.f32.mrb[16].mxu0 }
 0x656   : > { %v2902_v7 = vcombine.low %v2878_v16, %v2894_v63  ;;  %v2903_v22 = vcombine.high %v2878_v16, %v2894_v63  ;;  %v2918_v18 = vcombine.low %v2885_v37, %v2901_v57  ;;  %v2919_v58 = vcombine.high %v2885_v37, %v2901_v57  ;;  %v4404_v1 = vpop.f32.mrb[17].mxu0 }
 0x657   : > { %v2938_v13 = vcombine.low %v2594_v45, %v2772_v12  ;;  %v2939_v32 = vcombine.high %v2594_v45, %v2772_v12 }
 0x658   : > { %v2910_v23 = vrot.slane %v2902_v7, %v4912_v27  ;;  %v2917_v30 = vrot.slane %v2903_v22, %v4912_v27  ;;  %v2926_v38 = vrot.slane %v2918_v18, %v4912_v27  ;;  %v2933_v10 = vrot.slane %v2919_v58, %v4912_v27 }
 0x659   : > { %v2946_v31 = vrot.slane %v2938_v13, %v4907_v20  ;;  %v2953_v53 = vrot.slane %v2939_v32, %v4907_v20  ;;  %v2777_v11 = vpop.f32.mrb[18].mxu0 }
 0x65a   : > { %v3074_v15 = vcombine.low %v2910_v23, %v2917_v30  ;;  %v4177_v26 = vcombine.high %v2910_v23, %v2917_v30  ;;  %v3090_v2 = vcombine.low %v2926_v38, %v2933_v10  ;;  %v4178_v6 = vcombine.high %v2926_v38, %v2933_v10  ;;  %v2861_v36 = vpop.f32.mrb[32].mxu1  ;;  %v4407_v19 = vpop.f32.mrb[19].mxu0 }
 0x65b   : > { %v2954_v42 = vcombine.low %v2683_v56, %v2861_v36  ;;  %v2955_v4 = vcombine.high %v2683_v56, %v2861_v36  ;;  %v4419_v40 = vpop.f32.mrb[33].mxu1  ;;  %v3006_v21 = vcombine.low %v2599_v14, %v2777_v11  ;;  %v3007_v8 = vcombine.high %v2599_v14, %v2777_v11 }
 0x65c   : > { %v3081_v25 = vrot.slane %v3074_v15, %v4907_v20  ;;  %v3089_v33 = vrot.slane %v4177_v26, %v4907_v20  ;;  %v3097_v50 = vrot.slane %v3090_v2, %v4907_v20  ;;  %v3105_v24 = vrot.slane %v4178_v6, %v4907_v20  ;;  %v4546_v6 = vld [vmem:[%s4809_s24 + $0x8] sm:$0xff]  }
 0x65d   : > { %v2962_v28 = vrot.slane %v2954_v42, %v4907_v20  ;;  %v2969_v51 = vrot.slane %v2955_v4, %v4907_v20  ;;  %v3014_v29 = vrot.slane %v3006_v21, %v4907_v20  ;;  %v3021_v5 = vrot.slane %v3007_v8, %v4907_v20  ;;  %4425 = vmatprep.subr.bf16.mxu0 %v4546_v6 }
 0x65e   : > { %v2866_v52 = vpop.f32.mrb[34].mxu1  ;;  %v3107_v9 = vcombine.high %v3081_v25, %v3089_v33  ;;  %v3123_v45 = vcombine.high %v3097_v50, %v3105_v24  ;;  %v3106_v34 = vcombine.low %v3081_v25, %v3089_v33  ;;  %v3122_v14 = vcombine.low %v3097_v50, %v3105_v24  ;;  %v4547_v33 = vld [vmem:[%s4809_s24 + $0x10] sm:$0xff]   ;;  %4426 = vmatpush3.bf16.msra.mxu0 %v4546_v6 }
 0x65f   : > { %v2970_v55 = vcombine.low %v2946_v31, %v2962_v28  ;;  %v2971_v46 = vcombine.high %v2946_v31, %v2962_v28  ;;  %v2986_v62 = vcombine.low %v2953_v53, %v2969_v51  ;;  %v2987_v56 = vcombine.high %v2953_v53, %v2969_v51  ;;  %v4422_v54 = vpop.f32.mrb[35].mxu1  ;;  %4427 = vmatprep.subr.bf16.mxu0 %v4547_v33 }
 0x660   : > { %v3022_v3 = vcombine.low %v5448_v0, %v2866_v52  ;;  %v3023_v39 = vcombine.high %v5448_v0, %v2866_v52  ;;  %v3121_v41 = vrot.slane %v3107_v9, %v4912_v27  ;;  %v3137_v35 = vrot.slane %v3123_v45, %v4912_v27 }
 0x661   : > { %v2978_v17 = vrot.slane %v2970_v55, %v4912_v27  ;;  %v2985_v47 = vrot.slane %v2971_v46, %v4912_v27  ;;  %v2994_v61 = vrot.slane %v2986_v62, %v4912_v27  ;;  %v3001_v48 = vrot.slane %v2987_v56, %v4912_v27 }
 0x662   : > { %v3030_v59 = vrot.slane %v3022_v3, %v4907_v20  ;;  %v3037_v16 = vrot.slane %v3023_v39, %v4907_v20  ;;  %v3140_v37 = vcombine.low %v3121_v41, %v3137_v35  ;;  %v5479_v63 = vrot.slane %v3106_v34, %v4912_v27  ;;  %4428 = vmatpush3.bf16.msra.mxu0 %v4547_v33 }
 0x663   : > { %v3142_v0 = vcombine.low %v2978_v17, %v2985_v47  ;;  %v4179_v57 = vcombine.high %v2978_v17, %v2985_v47  ;;  %v3158_v12 = vcombine.low %v2994_v61, %v3001_v48  ;;  %v4180_v7 = vcombine.high %v2994_v61, %v3001_v48 }
 0x664   : > { %v3038_v22 = vcombine.low %v3014_v29, %v3030_v59  ;;  %v3039_v18 = vcombine.high %v3014_v29, %v3030_v59  ;;  %v3054_v58 = vcombine.low %v3021_v5, %v3037_v16  ;;  %v3055_v1 = vcombine.high %v3021_v5, %v3037_v16 }
 0x665   : > { %v3149_v13 = vrot.slane %v3142_v0, %v4907_v20  ;;  %v3157_v32 = vrot.slane %v4179_v57, %v4907_v20  ;;  %v3165_v23 = vrot.slane %v3158_v12, %v4907_v20  ;;  %v3173_v30 = vrot.slane %v4180_v7, %v4907_v20 }
 0x666   : > { %v3046_v38 = vrot.slane %v3038_v22, %v4912_v27  ;;  %v3053_v10 = vrot.slane %v3039_v18, %v4912_v27  ;;  %v3062_v31 = vrot.slane %v3054_v58, %v4912_v27  ;;  %v3069_v53 = vrot.slane %v3055_v1, %v4912_v27 }
 0x667   : > { %v3175_v11 = vcombine.high %v3149_v13, %v3157_v32  ;;  %v3191_v15 = vcombine.high %v3165_v23, %v3173_v30  ;;  %v5490_v26 = vrot.slane %v3122_v14, %v4912_v27  ;;  %v3174_v2 = vcombine.low %v3149_v13, %v3157_v32 }
 0x668   : > { %v3210_v36 = vcombine.low %v3046_v38, %v3053_v10  ;;  %v4181_v19 = vcombine.high %v3046_v38, %v3053_v10  ;;  %v3226_v42 = vcombine.low %v3062_v31, %v3069_v53  ;;  %v4182_v4 = vcombine.high %v3062_v31, %v3069_v53 }
 0x669   : > { %v3189_v40 = vrot.slane %v3175_v11, %v4912_v27  ;;  %v3205_v21 = vrot.slane %v3191_v15, %v4912_v27  ;;  %v3138_v8 = vcombine.low %v5479_v63, %v5490_v26  ;;  %v3139_v25 = vcombine.high %v5479_v63, %v5490_v26 }
 0x66a   : > { %v3182_v50 = vrot.slane %v3174_v2, %v4912_v27  ;;  %v3190_v24 = vcombine.low %v3165_v23, %v3173_v30  ;;  %v3141_v28 = vcombine.high %v3121_v41, %v3137_v35  ;;  %v3217_v51 = vrot.slane %v3210_v36, %v4907_v20  ;;  %v4548_v41 = vld [vmem:[%s4809_s24 + $0x18] sm:$0xff]  }
 0x66b   : > { %v3208_v29 = vcombine.low %v3189_v40, %v3205_v21  ;;  %v3209_v5 = vcombine.high %v3189_v40, %v3205_v21  ;;  %v3225_v52 = vrot.slane %v4181_v19, %v4907_v20  ;;  %v3233_v9 = vrot.slane %v3226_v42, %v4907_v20  ;;  %4429 = vmatprep.subr.bf16.mxu0 %v4548_v41  ;;  %v5518_v19 = vld [vmem:[%s4824_s0] sm:$0x3f] }
 0x66c   : > { %v3198_v45 = vrot.slane %v3190_v24, %v4912_v27  ;;  %v3241_v34 = vrot.slane %v4182_v4, %v4907_v20  ;;  %4430 = vmatpush3.bf16.msra.mxu0 %v4548_v41  ;;  %v3337_v36 = vsub.s32 4, %v4864_v43 }
 0x66d   : > { %v4523_v14 = vpack.i.bf16 %v3208_v29, %v3140_v37  ;;  %v4528_v55 = vpack.i.bf16 %v3209_v5, %v3141_v28  ;;  %v3242_v46 = vcombine.low %v3217_v51, %v3225_v52  ;;  %v3243_v62 = vcombine.high %v3217_v51, %v3225_v52  ;;  %v4663_v51 = vld [vmem:[%s4829_s1 + $0x10] sm:$0xff]  ;;  %v4664_v5 = vld [vmem:[%s4829_s1 + $0x8] sm:$0xff] }
 0x66e   : > { %v3207_v56 = vcombine.high %v3182_v50, %v3198_v45  ;;  %v3206_v54 = vcombine.low %v3182_v50, %v3198_v45  ;;  %v3258_v3 = vcombine.low %v3233_v9, %v3241_v34  ;;  %v3259_v39 = vcombine.high %v3233_v9, %v3241_v34  ;;  %v4662_v50 = vld [vmem:[%s4829_s1] sm:$0xff] }
 0x66f   : > { %4524 = vrot.lane.b32.xlu1 %v4523_v14, %s4715_s13  ;;  %v3250_v35 = vrot.slane %v3242_v46, %v4912_v27  ;;  %v3257_v17 = vrot.slane %v3243_v62, %v4912_v27  ;;  %v3338_v42 = vrot.slane %v5518_v19, %v3337_v36 }
 0x670   : > { %v4518_v47 = vpack.i.bf16 %v3207_v56, %v3139_v25  ;;  %v3266_v61 = vrot.slane %v3258_v3, %v4912_v27  ;;  %v3273_v20 = vrot.slane %v3259_v39, %v4912_v27 }
 0x672   : > { %4519 = vrot.lane.b32.xlu0 %v4518_v47, %s4716_s18  ;;  %v3275_v48 = vcombine.high %v3250_v35, %v3266_v61  ;;  %v3276_v59 = vcombine.low %v3257_v17, %v3273_v20  ;;  %v3277_v16 = vcombine.high %v3257_v17, %v3273_v20  ;;  %v3274_v37 = vcombine.low %v3250_v35, %v3266_v61 }
 0x674   : > { %3285 = vrot.lane.b32.xlu1 %v3275_v48, %s4716_s18 }
 0x676   : > { %4529 = vrot.lane.b32.xlu0 %v4528_v55, %s4717_s21 }
 0x678   : > { %3297 = vrot.lane.b32.xlu1 %v3276_v59, %s4715_s13  ;;  %v4551_v59 = vld [vmem:[%s4814_s28 + $0x4] ss:$8 sps:$4 sm:$0xff]  }
 0x679   : > { %3573 = vmatprep.subr.bf16.mxu1 %v4551_v59 }
 0x67c   : > { %3309 = vrot.lane.b32.xlu1 %v3277_v16, %s4717_s21  ;;  %v4549_v16 = vld [vmem:[%s4814_s28] ss:$8 sps:$4 sm:$0xff]  }
 0x67d   : > { %3574 = vmatpush1.bf16.msra.mxu1 %v4549_v16 }
 0x6e1   : > { %v4525_v63 = vpop.permute.xlu1 %4524 }
 0x6e2   : > { %v4527_v7 = vunpack.i.h.bf16 %v4525_v63  ;;  %v4526_v22 = vunpack.i.l.bf16 %v4525_v63  ;;  %v4552_v63 = vld [vmem:[%s4814_s28 + $0x10] ss:$8 sps:$4 sm:$0xff]  }
 0x6e4   : > { %v4520_v0 = vpop.permute.xlu0 %4519 }
 0x6e5   : > { %v4522_v57 = vunpack.i.h.bf16 %v4520_v0  ;;  %v4521_v12 = vunpack.i.l.bf16 %v4520_v0  ;;  %v4555_v0 = vld [vmem:[%s4814_s28 + $0x20] ss:$8 sps:$4 sm:$0xff]  }
 0x6e6   : > { %v3286_v27 = vpop.permute.xlu1 %3285 }
 0x6e7   : > { %v3314_v18 = vsel %vm1971_vm3, %v3138_v8, %v4521_v12  ;;  %v3315_v58 = vsel %vm1971_vm3, %v3206_v54, %v4522_v57  ;;  %v3316_v11 = vsel %vm1971_vm3, %v3274_v37, %v3286_v27  ;;  %v4554_v37 = vld [vmem:[%s4814_s28 + $0x14] ss:$8 sps:$4 sm:$0xff]   ;;  %v4557_v57 = vld [vmem:[%s4814_s28 + $0x24] ss:$8 sps:$4 sm:$0xff]  }
 0x6e8   : > { %v4530_v1 = vpop.permute.xlu0 %4529  ;;  %v3318_v23 = vsel %vm3317_vm7, %v3314_v18, %v4526_v22  ;;  %v3319_v30 = vsel %vm3317_vm7, %v3315_v58, %v4527_v7  ;;  %3575 = vmatprep.subr.bf16.mxu1 %v4554_v37  ;;  %v4560_v12 = vld [vmem:[%s4814_s28 + $0x34] ss:$8 sps:$4 sm:$0xff]   ;;  %v4558_v7 = vld [vmem:[%s4814_s28 + $0x30] ss:$8 sps:$4 sm:$0xff]  }
 0x6e9   : > { %v4532_v13 = vunpack.i.h.bf16 %v4530_v1  ;;  %v4531_v32 = vunpack.i.l.bf16 %v4530_v1  ;;  %3576 = vmatpush1.bf16.msra.mxu1 %v4552_v63 }
 0x6ea   : > { %v3298_v38 = vpop.permute.xlu1 %3297  ;;  %3577 = vmatprep.subr.bf16.mxu1 %v4557_v57 }
 0x6eb   : > { %v3322_v10 = vsel %vm3321_vm8, %v3318_v23, %v4531_v32  ;;  %v3323_v31 = vsel %vm3321_vm8, %v3319_v30, %v4532_v13  ;;  %v3320_v15 = vsel %vm3317_vm7, %v3316_v11, %v3298_v38  ;;  %v3461_v38 = vsub.s32 2, %v4864_v43 }
 0x6ec   : > { %v3333_v53 = vpack.c.bf16 %v3323_v31, %v3322_v10 }
 0x6ed   : > { %3578 = vmatpush1.bf16.msra.mxu1 %v4555_v0  ;;  %v3462_v31 = vrot.slane %v5518_v19, %v3461_v38 }
 0x6ee   : > { %4431 = vmatprep.mubr.msk.bf16.mxu0 %vm465_vm1, %v3333_v53  ;;  %v3310_v26 = vpop.permute.xlu1 %3309  ;;  %3579 = vmatprep.subr.bf16.mxu1 %v4560_v12  ;;  %v3468_v53 = vsub.s32 3, %v4864_v43 }
 0x6ef   : > { %v3324_v2 = vsel %vm3321_vm8, %v3320_v15, %v3310_v26 }
 0x6f0   : > { %v3334_v6 = vpack.c.bf16 %v3324_v2, %v3324_v2  ;;  %v3469_v2 = vrot.slane %v5518_v19, %v3468_v53 }
 0x6f1   : > { %3580 = vmatpush1.bf16.msra.mxu1 %v4558_v7 }
 0x6f2   : > { %4432 = vmatmul.mubr.msk.bf16.vlgmr.msra.gmra.mrb[20].mxu0 %vm465_vm1, %v3334_v6 }
 0x7c5   : > { %v4433_v4 = vpop.f32.mrb[20].mxu0 }
 0x7c6   : > { %v3403_v40 = vpop.f32.mrb[21].mxu0  ;;  %v3412_v21 = vadd.f32 %v4433_v4, %v3338_v42 }
 0x7c7   : > { %v3404_v8 = vadd.f32 %v3403_v40, %v3338_v42  ;;  %v4434_v25 = vpop.f32.mrb[22].mxu0 }
 0x7c8   : > { %v3406_v33 = vpop.f32.mrb[23].mxu0  ;;  %v5525_v29 = vadd.f32 %v4663_v51, %v3412_v21  ;;  %v4562_v51 = vld [vmem:[%s4819_s17] sm:$0xff]  }
 0x7c9   : > { %v5522_v24 = vadd.f32 %v4662_v50, %v3404_v8  ;;  %v3407_v28 = vadd.f32 %v3406_v33, %v3338_v42 }
 0x7ca   : > { %v3426_v34 = vsel %vm465_vm1, %v5525_v29, 0.0 }
 0x7cb   : > { %v5528_v52 = vadd.f32 %v4664_v5, %v3407_v28  ;;  %v3420_v9 = vsel %vm465_vm1, %v5522_v24, 0.0  ;;  %v4561_v28 = vld [vmem:[%s4819_s17 + $0x40] sm:$0xff]   ;;  %v4563_v5 = vld [vmem:[%s4819_s17 + $0x48] sm:$0xff]  }
 0x7cc   : > { %3421 = vadd.xlane.f32.xlu0 %v3420_v9  ;;  %4275 = vmatprep.subr.bf16.mxu0 %v4561_v28  ;;  %v4564_v9 = vld [vmem:[%s4819_s17 + $0x8] sm:$0xff]  }
 0x7cd   : > { %v3423_v45 = vsel %vm465_vm1, %v5528_v52, 0.0  ;;  %4276 = vmatpush3.bf16.msra.mxu0 %v4562_v51 }
 0x7ce   : > { %3424 = vadd.xlane.f32.xlu1 %v3423_v45  ;;  %4277 = vmatprep.subr.bf16.mxu0 %v4563_v5  ;;  %v4565_v45 = vld [vmem:[%s4819_s17 + $0x50] sm:$0xff]  }
 0x7d0   : > { %3427 = vadd.xlane.f32.xlu0 %v3426_v34  ;;  %v4567_v34 = vld [vmem:[%s4819_s17 + $0x58] sm:$0xff]  }
 0x7d1   : > { %4278 = vmatpush3.bf16.msra.mxu0 %v4564_v9 }
 0x7d2   : > { %4279 = vmatprep.subr.bf16.mxu0 %v4565_v45 }
 0x859   : > { %v3422_v14 = vpop.xlane.xlu0 %3421 }
 0x85a   : > { %v3429_v55 = vmul.f32 0.015625, %v3422_v14  ;;  %v4568_v14 = vld [vmem:[%s4819_s17 + $0x18] sm:$0xff]  }
 0x85b   : > { %v3425_v46 = vpop.xlane.xlu1 %3424 }
 0x85c   : > { %v3432_v62 = vsub.f32 %v5522_v24, %v3429_v55  ;;  %v3430_v56 = vmul.f32 0.015625, %v3425_v46  ;;  %v4569_v55 = vld [vmem:[%s4819_s17 + $0x60] sm:$0xff]  }
 0x85d   : > { %v3428_v54 = vpop.xlane.xlu0 %3427  ;;  %v4570_v46 = vld [vmem:[%s4819_s17 + $0x20] sm:$0xff]  }
 0x85e   : > { %v3433_v3 = vsub.f32 %v5528_v52, %v3430_v56  ;;  %v3431_v39 = vmul.f32 0.015625, %v3428_v54  ;;  %v3435_v41 = vmul.f32 %v3432_v62, %v3432_v62  ;;  %v4572_v56 = vld [vmem:[%s4819_s17 + $0x28] sm:$0xff]   ;;  %v4573_v54 = vld [vmem:[%s4819_s17 + $0x70] sm:$0xff]  }
 0x860   : > { %v3434_v35 = vsub.f32 %v5525_v29, %v3431_v39  ;;  %v3438_v17 = vsel %vm465_vm1, %v3435_v41, 0.0  ;;  %v3436_v47 = vmul.f32 %v3433_v3, %v3433_v3  ;;  %v4575_v39 = vld [vmem:[%s4819_s17 + $0x78] sm:$0xff]  }
 0x861   : > { %3439 = vadd.xlane.f32.xlu0 %v3438_v17  ;;  %v4576_v41 = vld [vmem:[%s4819_s17 + $0x38] sm:$0xff]  }
 0x862   : > { %v3437_v61 = vmul.f32 %v3434_v35, %v3434_v35  ;;  %v3441_v20 = vsel %vm465_vm1, %v3436_v47, 0.0 }
 0x864   : > { %v3444_v48 = vsel %vm465_vm1, %v3437_v61, 0.0 }
 0x865   : > { %3442 = vadd.xlane.f32.xlu0 %v3441_v20  ;;  %3445 = vadd.xlane.f32.xlu1 %v3444_v48 }
 0x8ee   : > { %v3440_v22 = vpop.xlane.xlu0 %3439 }
 0x8ef   : > { %v3447_v27 = vmul.f32 0.015625, %v3440_v22 }
 0x8f1   : > { %v3450_v18 = vadd.f32 1e-05, %v3447_v27 }
 0x8f2   : > { %v3446_v58 = vpop.xlane.xlu1 %3445  ;;  %v3443_v1 = vpop.xlane.xlu0 %3442 }
 0x8f3   : > { %4631 = vrsqrt.f32 %v3450_v18  ;;  %v3449_v13 = vmul.f32 0.015625, %v3446_v58  ;;  %v3448_v32 = vmul.f32 0.015625, %v3443_v1 }
 0x8f5   : > { %v3452_v23 = vadd.f32 1e-05, %v3449_v13  ;;  %v3451_v30 = vadd.f32 1e-05, %v3448_v32 }
 0x8f7   : > { %4633 = vrsqrt.f32 %v3452_v23 }
 0x8f8   : > { %4635 = vrsqrt.f32 %v3451_v30 }
 0x8fd   : > { %v4632_v10 = vpop.eup %4631 }
 0x8fe   : > { %v3456_v11 = vmul.f32 %v4632_v10, %v3432_v62  ;;  %v4571_v62 = vld [vmem:[%s4819_s17 + $0x68] sm:$0xff]  }
 0x900   : > { %v3463_v6 = vmul.f32 %v3462_v31, %v3456_v11 }
 0x901   : > { %v4634_v15 = vpop.eup %4633 }
 0x902   : > { %v4636_v26 = vpop.eup %4635  ;;  %v3458_v42 = vmul.f32 %v4634_v15, %v3434_v35  ;;  %v3470_v40 = vadd.f32 %v3469_v2, %v3463_v6  ;;  %v3515_v35 = vld [vmem:[%s4839_s11] sm:$0x3] }
 0x903   : > { %v3457_v36 = vmul.f32 %v4636_v26, %v3433_v3  ;;  %v4574_v3 = vld [vmem:[%s4819_s17 + $0x30] sm:$0xff]   ;;  %v3520_v17 = vrot.slane %v3515_v35, %v4867_v44  ;;  %v3524_v47 = vrot.slane %v3515_v35, %v4872_v49 }
 0x904   : > { %v3465_v25 = vmul.f32 %v3462_v31, %v3458_v42 }
 0x905   : > { %v3464_v4 = vmul.f32 %v3462_v31, %v3457_v36 }
 0x906   : > { %v3472_v33 = vadd.f32 %v3469_v2, %v3465_v25 }
 0x907   : > { %v3471_v21 = vadd.f32 %v3469_v2, %v3464_v4 }
 0x908   : > { %v3514_v50 = vpack.c.bf16 %v3472_v33, %v3472_v33 }
 0x909   : > { %v3513_v8 = vpack.c.bf16 %v3471_v21, %v3470_v40 }
 0x90b   : > { %4197 = vmatmul.mubr.msk.bf16.vlgmr.msra.gmra.mrb[36].mxu1 %vm465_vm1, %v3513_v8 }
 0x90c   : > { %3615 = vmatprep.mubr.bf16.mxu1 %v5721_v60  ;;  %v4566_v60 = vld [vmem:[%s4819_s17 + $0x10] sm:$0xff]  }
 0x90d   : > { %4280 = vmatpush3.bf16.msra.mxu0 %v4566_v60 }
 0x90e   : > { %4281 = vmatprep.subr.bf16.mxu0 %v4567_v34 }
 0x911   : > { %4282 = vmatpush3.bf16.msra.mxu0 %v4568_v14 }
 0x912   : > { %4283 = vmatprep.subr.bf16.mxu0 %v4569_v55 }
 0x913   : > { %4198 = vmatmul.mubr.msk.bf16.gmra.mrb[40].mxu1 %vm465_vm1, %v3514_v50 }
 0x915   : > { %4284 = vmatpush3.bf16.msra.mxu0 %v4570_v46 }
 0x916   : > { %4285 = vmatprep.subr.bf16.mxu0 %v4571_v62 }
 0x919   : > { %4286 = vmatpush3.bf16.msra.mxu0 %v4572_v56 }
 0x91a   : > { %4287 = vmatprep.subr.bf16.mxu0 %v4573_v54 }
 0x91d   : > { %4288 = vmatpush3.bf16.msra.mxu0 %v4574_v3 }
 0x91e   : > { %4289 = vmatprep.subr.bf16.mxu0 %v4575_v39 }
 0x921   : > { %4290 = vmatpush3.bf16.msra.mxu0 %v4576_v41 }
 0x9de   : > { %v3607_v61 = vpop.f32.mrb[36].mxu1 }
 0x9df   : > { %v5576_v20 = vadd.f32 %v3607_v61, %v3520_v17  ;;  %v3609_v48 = vpop.f32.mrb[37].mxu1 }
 0x9e0   : > { %v5578_v59 = vadd.f32 %v3609_v48, %v3524_v47  ;;  %v3611_v16 = vpop.f32.mrb[38].mxu1 }
 0x9e1   : > { %v5581_v37 = vmul.f32 0.70710677, %v5576_v20  ;;  %v5583_v63 = vadd.f32 %v3611_v16, %v3520_v17  ;;  %v3613_v0 = vpop.f32.mrb[39].mxu1 }
 0x9e2   : > { %v5586_v57 = vmul.f32 0.70710677, %v5578_v59  ;;  %v5592_v12 = vadd.f32 %v3613_v0, %v3524_v47 }
 0x9e3   : > { %v3648_v44 = vand.u32 2147483647, %v5581_v37  ;;  %v5590_v49 = vmul.f32 0.70710677, %v5583_v63  ;;  %vm3636_vm9 = vcmp.ge.f32.partialorder %v5581_v37, 0.0 }
 0x9e4   : > { %v3649_v7 = vand.u32 2147483647, %v5586_v57  ;;  %v5597_v1 = vmul.f32 0.70710677, %v5592_v12  ;;  %vm3637_vm10 = vcmp.ge.f32.partialorder %v5586_v57, 0.0  ;;  %v3626_v57 = vmul.f32 0.5, %v5583_v63 }
 0x9e5   : > { %v3654_v22 = vmul.f32 0.3275911, %v3648_v44  ;;  %v3650_v18 = vand.u32 2147483647, %v5590_v49  ;;  %v3732_v36 = vsub.f32 0.0, %v3648_v44  ;;  %vm3638_vm11 = vcmp.ge.f32.partialorder %v5590_v49, 0.0 }
 0x9e6   : > { %v3655_v27 = vmul.f32 0.3275911, %v3649_v7  ;;  %v3617_v13 = vpop.f32.mrb[40].mxu1  ;;  %v3651_v38 = vand.u32 2147483647, %v5597_v1  ;;  %v3733_v4 = vsub.f32 0.0, %v3649_v7 }
 0x9e7   : > { %v3660_v58 = vadd.f32 1.0, %v3654_v22  ;;  %v3656_v23 = vmul.f32 0.3275911, %v3650_v18  ;;  %v3619_v30 = vpop.f32.mrb[41].mxu1  ;;  %v5600_v15 = vadd.f32 %v3617_v13, %v3520_v17  ;;  %v3738_v33 = vmul.f32 %v3732_v36, %v3648_v44 }
 0x9e8   : > { %v3661_v32 = vadd.f32 1.0, %v3655_v27  ;;  %v3621_v10 = vpop.f32.mrb[42].mxu1  ;;  %v3657_v11 = vmul.f32 0.3275911, %v3651_v38  ;;  %v5602_v26 = vadd.f32 %v3619_v30, %v3524_v47  ;;  %v3734_v50 = vsub.f32 0.0, %v3650_v18 }
 0x9e9   : > { %4637 = vrcp.f32 %v3660_v58  ;;  %v3662_v31 = vadd.f32 1.0, %v3656_v23  ;;  %v3622_v53 = vpop.f32.mrb[43].mxu1  ;;  %v5605_v6 = vmul.f32 0.70710677, %v5600_v15  ;;  %v3739_v9 = vmul.f32 %v3733_v4, %v3649_v7 }
 0x9ea   : > { %4639 = vrcp.f32 %v3661_v32  ;;  %v3663_v2 = vadd.f32 1.0, %v3657_v11  ;;  %v5608_v42 = vmul.f32 0.70710677, %v5602_v26  ;;  %v3735_v34 = vsub.f32 0.0, %v3651_v38 }
 0x9eb   : > { %4641 = vrcp.f32 %v3662_v31  ;;  %v3652_v40 = vand.u32 2147483647, %v5605_v6  ;;  %v3744_v62 = vmul.f32 1.442695, %v3738_v33  ;;  %v3740_v54 = vmul.f32 %v3734_v50, %v3650_v18 }
 0x9ec   : > { %4643 = vrcp.f32 %v3663_v2  ;;  %v3653_v21 = vand.u32 2147483647, %v5608_v42  ;;  %v3746_v39 = vmul.f32 1.442695, %v3739_v9  ;;  %v3741_v47 = vmul.f32 %v3735_v34, %v3651_v38 }
 0x9ed   : > { %v3658_v8 = vmul.f32 0.3275911, %v3652_v40  ;;  %v3748_v44 = vmul.f32 1.442695, %v3740_v54  ;;  %v3736_v7 = vsub.f32 0.0, %v3652_v40  ;;  %vm3639_vm12 = vcmp.ge.f32.partialorder %v5597_v1, 0.0 }
 0x9ee   : > { %v3659_v28 = vmul.f32 0.3275911, %v3653_v21  ;;  %v3750_v13 = vmul.f32 1.442695, %v3741_v47  ;;  %v3737_v32 = vsub.f32 0.0, %v3653_v21  ;;  %vm3640_vm13 = vcmp.ge.f32.partialorder %v5605_v6, 0.0 }
 0x9ef   : > { %v3664_v45 = vadd.f32 1.0, %v3658_v8  ;;  %v3742_v31 = vmul.f32 %v3736_v7, %v3652_v40  ;;  %vm3641_vm14 = vcmp.ge.f32.partialorder %v5608_v42, 0.0  ;;  %v3629_v42 = vmul.f32 0.5, %v5602_v26 }
 0x9f0   : > { %v3665_v14 = vadd.f32 1.0, %v3659_v28  ;;  %v3743_v50 = vmul.f32 %v3737_v32, %v3653_v21 }
 0x9f1   : > { %4645 = vrcp.f32 %v3664_v45  ;;  %v3752_v34 = vmul.f32 1.442695, %v3742_v31 }
 0x9f2   : > { %4647 = vrcp.f32 %v3665_v14 }
 0x9f3   : > { %v4638_v25 = vpop.eup %4637  ;;  %4649 = vpow2.f32 %v3744_v62 }
 0x9f4   : > { %v5612_v51 = vpop.eup %4639  ;;  %v3678_v5 = vmul.f32 1.0614054, %v4638_v25  ;;  %4651 = vpow2.f32 %v3746_v39 }
 0x9f5   : > { %v3679_v60 = vmul.f32 1.0614054, %v5612_v51  ;;  %v5615_v46 = vpop.eup %4641  ;;  %4653 = vpow2.f32 %v3748_v44 }
 0x9f6   : > { %v3684_v55 = vadd.f32 -1.4531521, %v3678_v5  ;;  %v3680_v41 = vmul.f32 1.0614054, %v5615_v46  ;;  %v5618_v35 = vpop.eup %4643  ;;  %4655 = vpow2.f32 %v3750_v13 }
 0x9f7   : > { %v3685_v56 = vadd.f32 -1.4531521, %v3679_v60  ;;  %v3681_v16 = vmul.f32 1.0614054, %v5618_v35  ;;  %4657 = vpow2.f32 %v3752_v34 }
 0x9f8   : > { %v3690_v3 = vmul.f32 %v4638_v25, %v3684_v55  ;;  %v3686_v48 = vadd.f32 -1.4531521, %v3680_v41 }
 0x9f9   : > { %v3691_v17 = vmul.f32 %v5612_v51, %v3685_v56  ;;  %v3687_v18 = vadd.f32 -1.4531521, %v3681_v16 }
 0x9fa   : > { %v3696_v61 = vadd.f32 1.4214138, %v3690_v3  ;;  %v3692_v27 = vmul.f32 %v5615_v46, %v3686_v48  ;;  %v4718_v3 = vmov -1.0  }
 0x9fb   : > { %v3697_v0 = vadd.f32 1.4214138, %v3691_v17  ;;  %v3693_v38 = vmul.f32 %v5618_v35, %v3687_v18  ;;  %v5625_v53 = vpop.eup %4645  ;;  %v3642_v21 = vsel %vm3636_vm9, 1.0, %v4718_v3  ;;  %v3754_v17 = vmul.f32 1.442695, %v3743_v50 }
 0x9fc   : > { %v3702_v22 = vmul.f32 %v4638_v25, %v3696_v61  ;;  %v3698_v30 = vadd.f32 1.4214138, %v3692_v27  ;;  %v5629_v4 = vpop.eup %4647  ;;  %v3682_v33 = vmul.f32 1.0614054, %v5625_v53  ;;  %v3645_v1 = vsel %vm3639_vm12, 1.0, %v4718_v3 }
 0x9fd   : > { %v3703_v58 = vmul.f32 %v5612_v51, %v3697_v0  ;;  %v3699_v36 = vadd.f32 1.4214138, %v3693_v38  ;;  %v3683_v9 = vmul.f32 1.0614054, %v5629_v4  ;;  %v4650_v54 = vpop.eup %4649  ;;  %4659 = vpow2.f32 %v3754_v17 }
 0x9fe   : > { %v3708_v23 = vadd.f32 -0.28449672, %v3702_v22  ;;  %v3704_v2 = vmul.f32 %v5615_v46, %v3698_v30  ;;  %v3688_v60 = vadd.f32 -1.4531521, %v3682_v33  ;;  %v4652_v47 = vpop.eup %4651 }
 0x9ff   : > { %v3709_v10 = vadd.f32 -0.28449672, %v3703_v58  ;;  %v3705_v40 = vmul.f32 %v5618_v35, %v3699_v36  ;;  %v3689_v56 = vadd.f32 -1.4531521, %v3683_v9  ;;  %v4654_v27 = vpop.eup %4653  ;;  %v3644_v36 = vsel %vm3638_vm11, 1.0, %v4718_v3 }
 0xa00   : > { %v3714_v11 = vmul.f32 %v4638_v25, %v3708_v23  ;;  %v3710_v5 = vadd.f32 -0.28449672, %v3704_v2  ;;  %v3694_v41 = vmul.f32 %v5625_v53, %v3688_v60  ;;  %v4656_v38 = vpop.eup %4655 }
 0xa01   : > { %v3715_v8 = vmul.f32 %v5612_v51, %v3709_v10  ;;  %v3711_v62 = vadd.f32 -0.28449672, %v3705_v40  ;;  %v3695_v16 = vmul.f32 %v5629_v4, %v3689_v56 }
 0xa02   : > { %v3720_v28 = vadd.f32 0.2548296, %v3714_v11  ;;  %v3716_v55 = vmul.f32 %v5615_v46, %v3710_v5  ;;  %v3700_v44 = vadd.f32 1.4214138, %v3694_v41  ;;  %v3624_v5 = vmul.f32 0.5, %v5576_v20 }
 0xa03   : > { %v3721_v45 = vadd.f32 0.2548296, %v3715_v8 }
 0xa04   : > { %v3726_v14 = vmul.f32 %v4638_v25, %v3720_v28  ;;  %v3722_v48 = vadd.f32 0.2548296, %v3716_v55  ;;  %v3717_v25 = vmul.f32 %v5618_v35, %v3711_v62  ;;  %v3706_v58 = vmul.f32 %v5625_v53, %v3700_v44 }
 0xa05   : > { %v3727_v39 = vmul.f32 %v5612_v51, %v3721_v45  ;;  %v3701_v51 = vadd.f32 1.4214138, %v3695_v16  ;;  %v3625_v55 = vmul.f32 0.5, %v5578_v59  ;;  %v3627_v62 = vmul.f32 0.5, %v5592_v12 }
 0xa06   : > { %v3756_v61 = vmul.f32 %v4650_v54, %v3726_v14  ;;  %v3728_v37 = vmul.f32 %v5615_v46, %v3722_v48  ;;  %v3723_v22 = vadd.f32 0.2548296, %v3717_v25  ;;  %v3643_v46 = vsel %vm3637_vm10, 1.0, %v4718_v3  ;;  %v4658_v14 = vpop.eup %4657 }
 0xa07   : > { %v3757_v0 = vmul.f32 %v4652_v47, %v3727_v39  ;;  %v3707_v30 = vmul.f32 %v5629_v4, %v3701_v51  ;;  %v3712_v10 = vadd.f32 -0.28449672, %v3706_v58  ;;  %v4660_v63 = vpop.eup %4659  ;;  %v3646_v12 = vsel %vm3640_vm13, 1.0, %v4718_v3 }
 0xa08   : > { %v3762_v7 = vsub.f32 1.0, %v3756_v61  ;;  %v3758_v32 = vmul.f32 %v4654_v27, %v3728_v37  ;;  %v3729_v23 = vmul.f32 %v5618_v35, %v3723_v22 }
 0xa09   : > { %v3763_v18 = vsub.f32 1.0, %v3757_v0  ;;  %v3713_v2 = vadd.f32 -0.28449672, %v3707_v30  ;;  %v3718_v8 = vmul.f32 %v5625_v53, %v3712_v10  ;;  %v3647_v0 = vsel %vm3641_vm14, 1.0, %v4718_v3 }
 0xa0a   : > { %v3768_v13 = vmul.f32 %v3762_v7, %v3642_v21  ;;  %v3764_v11 = vsub.f32 1.0, %v3758_v32  ;;  %v3759_v49 = vmul.f32 %v4656_v38, %v3729_v23 }
 0xa0b   : > { %v3769_v31 = vmul.f32 %v3763_v18, %v3643_v46  ;;  %v3719_v28 = vmul.f32 %v5629_v4, %v3713_v2  ;;  %v3724_v40 = vadd.f32 0.2548296, %v3718_v8  ;;  %v3792_v18 = vsub.s32 5, %v4864_v43 }
 0xa0c   : > { %v3774_v33 = vadd.f32 1.0, %v3768_v13  ;;  %v3770_v35 = vmul.f32 %v3764_v11, %v3644_v36  ;;  %v3765_v50 = vsub.f32 1.0, %v3759_v49 }
 0xa0d   : > { %v3775_v9 = vadd.f32 1.0, %v3769_v31  ;;  %v3725_v34 = vadd.f32 0.2548296, %v3719_v28  ;;  %v3730_v56 = vmul.f32 %v5625_v53, %v3724_v40  ;;  %v3793_v58 = vrot.slane %v5518_v19, %v3792_v18 }
 0xa0e   : > { %v3776_v45 = vadd.f32 1.0, %v3770_v35  ;;  %v3771_v60 = vmul.f32 %v3765_v50, %v3645_v1  ;;  %v3780_v54 = vmul.f32 %v3774_v33, %v3624_v5 }
 0xa0f   : > { %v3731_v20 = vmul.f32 %v5629_v4, %v3725_v34  ;;  %v3760_v41 = vmul.f32 %v4658_v14, %v3730_v56  ;;  %v3781_v17 = vmul.f32 %v3775_v9, %v3625_v55  ;;  %v3628_v4 = vmul.f32 0.5, %v5600_v15 }
 0xa10   : > { %v3782_v21 = vmul.f32 %v3776_v45, %v3626_v57  ;;  %v3777_v39 = vadd.f32 1.0, %v3771_v60 }
 0xa11   : > { %v3761_v48 = vmul.f32 %v4660_v63, %v3731_v20  ;;  %v3766_v59 = vsub.f32 1.0, %v3760_v41 }
 0xa12   : > { %v3786_v47 = vpack.c.bf16 %v3782_v21, %v3780_v54  ;;  %v3783_v61 = vmul.f32 %v3777_v39, %v3627_v62 }
 0xa13   : > { %v3767_v25 = vsub.f32 1.0, %v3761_v48  ;;  %v3772_v16 = vmul.f32 %v3766_v59, %v3646_v12 }
 0xa14   : > { %v3787_v53 = vpack.c.bf16 %v3783_v61, %v3781_v17 }
 0xa15   : > { %v3773_v44 = vmul.f32 %v3767_v25, %v3647_v0  ;;  %v3778_v6 = vadd.f32 1.0, %v3772_v16 }
 0xa16   : > { %3922 = vmatprep.mubr.bf16.mxu0 %v3787_v53 }
 0xa17   : > { %3923 = vmatmul.mubr.bf16.vlgmr.msra.gmra.mrb[24].mxu0 %v3786_v47  ;;  %v3779_v7 = vadd.f32 1.0, %v3773_v44  ;;  %v3784_v37 = vmul.f32 %v3778_v6, %v3628_v4 }
 0xa19   : > { %v3785_v22 = vmul.f32 %v3779_v7, %v3629_v42  ;;  %v3788_v27 = vpack.c.bf16 %v3784_v37, %v3784_v37 }
 0xa1b   : > { %v3789_v51 = vpack.c.bf16 %v3785_v22, %v3785_v22 }
 0xa1d   : > { %3930 = vmatprep.mubr.bf16.mxu0 %v3789_v51 }
 0xa1f   : > { %3931 = vmatmul.mubr.bf16.gmra.mrb[28].mxu0 %v3788_v27 }
 0xaea   : > { %v4291_v3 = vpop.f32.mrb[24].mxu0 }
 0xaeb   : > { %v4292_v13 = vpop.f32.mrb[25].mxu0 }
 0xaec   : > { %v4293_v15 = vadd.f32 %v4292_v13, %v4291_v3  ;;  %v4294_v32 = vpop.f32.mrb[26].mxu0 }
 0xaed   : > { %v4295_v23 = vpop.f32.mrb[27].mxu0 }
 0xaee   : > { %v3925_v26 = vadd.f32 %v4293_v15, %v3793_v58  ;;  %v4296_v30 = vadd.f32 %v4295_v23, %v4294_v32 }
 0xaf0   : > { %v3938_v38 = vadd.f32 %v3925_v26, %v5522_v24  ;;  %v3928_v46 = vadd.f32 %v4296_v30, %v3793_v58 }
 0xaf2   : > { %3941 = vst.msk [vmem:[%s4829_s1] sm:$0xff] %vm465_vm1, %v3938_v38  ;;  %v3939_v10 = vadd.f32 %v3928_v46, %v5528_v52  ;;  %v4297_v31 = vpop.f32.mrb[28].mxu0 }
 0xaf3   : > { %v4298_v11 = vpop.f32.mrb[29].mxu0 }
 0xaf4   : > { %3942 = vst.msk [vmem:[%s4829_s1 + $0x8] sm:$0xff] %vm465_vm1, %v3939_v10  ;;  %v4299_v43 = vadd.f32 %v4298_v11, %v4297_v31  ;;  %v4300_v19 = vpop.f32.mrb[30].mxu0 }
 0xaf5   : > { %v4301_v49 = vpop.f32.mrb[31].mxu0 }
 0xaf6   : > { %v3933_v2 = vadd.f32 %v4299_v43, %v3793_v58 }
 0xaf8   : > { %v3940_v36 = vadd.f32 %v3933_v2, %v5525_v29 }
 0xafa   : > { %3943 = vst.msk [vmem:[%s4829_s1 + $0x10] sm:$0xff] %vm465_vm1, %v3940_v36 }
 0xafb PF: > { %s18_s9 = sadd.s32 1, %s4703_s9   ;;  %s5722_s28 = sld [smem:[#allocation2_spill]] }
 0xafc   : > { %p15_p8 = scmp.ge.s32.totalorder %s18_s9, 6   ;;  %s5723_s0 = sld [smem:[#allocation3_spill]] }
 0xafd   : > { %s5724_s30 = sld [smem:[#allocation4_spill]]  ;;  %s5725_s27 = smov %s4695_s29 }
 0xafe   :  { %17 = sbr.rel (!%p15_p8) target bundleno = 4 (0x4), region = 107 }
 0xb02   : > { %s5726_s29 = smov %s5723_s0 }

</bundles_post_ra>
